<compile_context>
chip_gen: v7x
topology: tpu7x:2x2x1
jax: 0.10.0
libtpu: 0.0.40
codegen_flags: <defaults>
</compile_context>

<pallas_src>
import jax
import jax.numpy as jnp
from jax.experimental import pallas as pl
from jax.experimental.pallas import tpu as pltpu

_NEG_BIG = -1e30  # "-inf" stand-in that can never produce inf - inf -> NaN


def _round_up(x, m):
    return ((x + m - 1) // m) * m


def _vmem_capacity_bytes():
    try:
        return int(pltpu.get_tpu_info().vmem_capacity_bytes)
    except Exception:
        return 64 * 1024 * 1024  # conservative (v7x-sized) fallback


def prepare_attention_params(attn_weight, attn_bias, v_weight, hidden_dim,
                             operand_dtype=jnp.bfloat16):
    """One-time parameter re-layout + dtype cast (hoisted out of the per-call path).

    attn_weight : (dec_O, dec_H + dec_O)   PyTorch Linear layout (out, in)
    attn_bias   : (dec_O,)
    v_weight    : (1, dec_O)

    The attn matrix is split so cat([hidden, output_history]) @ W^T becomes
    hidden @ W_h + output_history @ W_o (no per-call concat/repeat).  W_h/W_o are
    carried in `operand_dtype` (bf16 by default) as the MXU / HBM-DMA operands;
    bias and v stay f32 because all elementwise/softmax math is done in f32.
    """
    wa_t = attn_weight.T                                   # (H + O, O)
    wa_h = wa_t[:hidden_dim, :].astype(operand_dtype)      # (H, O)  acts on `hidden`
    wa_o = wa_t[hidden_dim:, :].astype(operand_dtype)      # (O, O)  acts on history
    ba = attn_bias.reshape(1, -1).astype(jnp.float32)      # (1, O)
    v = v_weight.reshape(1, -1).astype(jnp.float32)        # (1, O)
    return wa_h, wa_o, ba, v


def _choose_blocks(B, T, H, O, operand_bytes, out_bytes, block_b, block_t):
    """Pick (Bb, Tt): per-step DMA big enough to track the HBM roofline (~1-2 MiB),
    >= ~256 rows for the main MXU matmul, and a double-buffered working set that
    fits the per-generation VMEM budget (re-derived from the actual chip; v7x only
    has 64 MiB physical)."""
    t_align = 8  # keeps the in-kernel (Bb, Tt, O) -> (Bb*Tt, O) collapse a view
    B8 = _round_up(max(B, 1), 8)

    if block_t is not None:
        Tt = _round_up(max(block_t, 1), t_align)
    else:
        Tt = min(_round_up(max(T, 1), t_align), 512)
    T_pad = _round_up(max(T, 1), Tt)
    num_t = T_pad // Tt

    vmem_cap = _vmem_capacity_bytes()
    work_budget = min(vmem_cap // 3, 28 * 1024 * 1024)  # headroom for Mosaic scratch

    if block_b is not None:
        Bb = min(_round_up(max(block_b, 1), 8), B8)
    else:
        target_block_bytes = 2 * 1024 * 1024            # ~1-2 MiB oh DMA per step
        rows_target = -(-256 // Tt)                      # Bb*Tt >= 256 MXU rows
        Bb = max(target_block_bytes // max(Tt * O * operand_bytes, 1), rows_target, 8)
        Bb = min(_round_up(int(Bb), 8), B8)
        # v7x has 2 TensorCores: keep >= 2 grid steps over batch when the halved
        # block still feeds a full MXU pass (harmless on v5e/v6e).
        half = _round_up(-(-B8 // 2), 8)
        if Bb >= B8 and B8 > 8 and half * Tt >= 256:
            Bb = half

    def vmem_usage(bb):
        return (2 * bb * Tt * O * operand_bytes          # output_history (dbl-buffered)
                + 2 * bb * H * operand_bytes             # hidden
                + 2 * (H * O + O * O) * operand_bytes    # weights (<= 2 copies)
                + 4 * O * 4                              # bias + v
                + 2 * (bb * O + bb * T_pad) * out_bytes  # outputs
                + (bb * (O + 2) + num_t * bb * Tt) * 4)  # f32 scratch

    while Bb > 8 and vmem_usage(Bb) > work_budget:
        Bb -= 8

    B_pad = _round_up(max(B, 1), Bb)
    return Bb, Tt, B_pad, T_pad


def attention_forward(hidden, output_history, wa_h, wa_o, ba, v, *,
                      block_b=None, block_t=None):
    """
    hidden:          (B, H)   with H == output_dim (the module's dec_H)
    output_history:  (B, T, O)
    wa_h/wa_o/ba/v:  from prepare_attention_params (wa_h/wa_o fix the operand dtype)
    returns: w (B, 1, O) f32, attention (B, T) f32
    """
    B, H = hidden.shape
    _, T, O = output_history.shape
    operand_dtype = wa_h.dtype
    out_dtype = jnp.float32
    operand_bytes = jnp.dtype(operand_dtype).itemsize
    out_bytes = jnp.dtype(out_dtype).itemsize

    Bb, Tt, B_pad, T_pad = _choose_blocks(B, T, H, O, operand_bytes, out_bytes,
                                          block_b, block_t)
    num_b = B_pad // Bb
    num_t = T_pad // Tt
    mask_t = (T_pad != T)  # only the last T block can contain padded positions

    # MXU / HBM-DMA operands in the (usually bf16) operand dtype; f32 accumulation
    # and f32 elementwise in-kernel (v5e has no bf16 VPU/EUP path).
    hidden = hidden.astype(operand_dtype)
    output_history = output_history.astype(operand_dtype)
    ba = ba.astype(jnp.float32)
    v = v.astype(jnp.float32)

    # Pad batch / history so every block is full; padded rows produce finite values
    # and are sliced off, padded history positions are masked in-kernel.
    if B_pad != B:
        hidden = jnp.pad(hidden, ((0, B_pad - B), (0, 0)))
    if B_pad != B or T_pad != T:
        output_history = jnp.pad(output_history,
                                 ((0, B_pad - B), (0, T_pad - T), (0, 0)))

    def kernel(h_ref, oh_ref, wah_ref, wao_ref, ba_ref, v_ref,
               w_ref, attn_ref, m_sc, l_sc, acc_sc, logits_sc):
        t = pl.program_id(1)

        @pl.when(t == 0)
        def _():
            m_sc[...] = jnp.full_like(m_sc, _NEG_BIG)
            l_sc[...] = jnp.zeros_like(l_sc)
            acc_sc[...] = jnp.zeros_like(acc_sc)

        h = h_ref[...]                                   # (Bb, H)   operand dtype
        oh = oh_ref[...]                                 # (Bb, Tt, O)
        oh_f32 = oh.astype(jnp.float32)

        # cat([h, oh]) @ W^T == h @ W_h + oh @ W_o ; bias folded into the small
        # (Bb, O) projection instead of the full (Bb, Tt, O) energy.
        proj_h = jnp.dot(h, wah_ref[...],
                         preferred_element_type=jnp.float32) + ba_ref[...]  # (Bb, O)
        proj_o = jnp.dot(oh.reshape(Bb * Tt, O), wao_ref[...],
                         preferred_element_type=jnp.float32).reshape(Bb, Tt, O)

        energy = jnp.tanh(proj_o + proj_h[:, None, :])   # (Bb, Tt, O) f32, EUP

        # scores: VPU mul + XLU lane reduce — not an M=1 batched matmul (which would
        # waste 255/256 MXU rows); the MXU is busy with proj_o anyway.
        vvec = v_ref[...].reshape(1, 1, O)
        logits = jnp.sum(energy * vvec, axis=-1)         # (Bb, Tt)

        if mask_t:
            pos = t * Tt + jax.lax.broadcasted_iota(jnp.int32, (Bb, Tt), 1)
            logits = jnp.where(pos < T, logits, _NEG_BIG)

        logits_sc[t] = logits  # raw logits kept so attention weights can be emitted

        # Online softmax over the T grid axis (running max / sum / context).
        m_prev = m_sc[...]
        m_new = jnp.maximum(m_prev, jnp.max(logits, axis=-1, keepdims=True))
        alpha = jnp.exp(m_prev - m_new)                  # (Bb, 1)
        p = jnp.exp(logits - m_new)                      # (Bb, Tt)
        l_sc[...] = alpha * l_sc[...] + jnp.sum(p, axis=-1, keepdims=True)
        # context: VPU mul + XLU sublane reduce (again not an M=1 batched matmul).
        ctx = jnp.sum(p[:, :, None] * oh_f32, axis=1)    # (Bb, O)
        acc_sc[...] = alpha * acc_sc[...] + ctx
        m_sc[...] = m_new

        @pl.when(t == pl.num_programs(1) - 1)
        def _():
            l = l_sc[...]
            inv = pl.reciprocal(l, approx=True)          # EUP vrcp (idle slot)
            inv = inv * (2.0 - l * inv)                  # 1 Newton step -> f32 accuracy
            w_ref[...] = (acc_sc[...] * inv).astype(w_ref.dtype)
            m_fin = m_sc[...]
            for tb in range(num_t):                      # static unroll, static slices
                a_tb = jnp.exp(logits_sc[tb] - m_fin) * inv
                attn_ref[:, tb * Tt:(tb + 1) * Tt] = a_tb.astype(attn_ref.dtype)

    vmem_cap = _vmem_capacity_bytes()
    compiler_params = pltpu.CompilerParams(
        dimension_semantics=("parallel", "arbitrary"),
        vmem_limit_bytes=min(int(vmem_cap * 3 // 4), 96 * 1024 * 1024),
    )
    out_shape = (jax.ShapeDtypeStruct((B_pad, O), out_dtype),
                 jax.ShapeDtypeStruct((B_pad, T_pad), out_dtype))
    out_specs = [pl.BlockSpec((Bb, O), lambda b, t: (b, 0)),        # w (dense 2D slab)
                 pl.BlockSpec((Bb, T_pad), lambda b, t: (b, 0))]    # attention
    scratch_shapes = [pltpu.VMEM((Bb, 1), jnp.float32),             # running max
                      pltpu.VMEM((Bb, 1), jnp.float32),             # running sum
                      pltpu.VMEM((Bb, O), jnp.float32),             # context accum
                      pltpu.VMEM((num_t, Bb, Tt), jnp.float32)]     # raw logits

    def run(single_buffer_weights):
        # Constant-index weight blocks don't need double-buffering; freeing that
        # VMEM matters most on v7x (64 MiB).
        wkw = dict(pipeline_mode=pl.Buffered(1)) if single_buffer_weights else {}
        in_specs = [
            pl.BlockSpec((Bb, H), lambda b, t: (b, 0)),             # hidden
            pl.BlockSpec((Bb, Tt, O), lambda b, t: (b, t, 0)),      # output_history
            pl.BlockSpec((H, O), lambda b, t: (0, 0), **wkw),       # wa_h
            pl.BlockSpec((O, O), lambda b, t: (0, 0), **wkw),       # wa_o
            pl.BlockSpec((1, O), lambda b, t: (0, 0), **wkw),       # bias
            pl.BlockSpec((1, O), lambda b, t: (0, 0), **wkw),       # v
        ]
        out = pl.pallas_call(
            kernel,
            out_shape=out_shape,
            grid_spec=pltpu.PrefetchScalarGridSpec(
                num_scalar_prefetch=0,
                grid=(num_b, num_t),
                in_specs=in_specs,
                out_specs=out_specs,
                scratch_shapes=scratch_shapes),
            compiler_params=compiler_params,
        )(hidden, output_history, wa_h, wa_o, ba, v)
        jax.block_until_ready(out)
        return out

    try:
        w2, attn2 = run(True)
    except Exception:
        # TODO(synk): pipeline_mode=pl.Buffered(1) unsupported on this jax build;
        # fall back to default double-buffered weight blocks.
        w2, attn2 = run(False)

    w = w2[:B, None, :]         # (B, 1, O), as returned by the PyTorch module
    attention = attn2[:B, :T]   # (B, T)
    return w, attention


def reference_forward(hidden, output_history, attn_weight, attn_bias, v_weight):
    """Plain-JAX (f32) reference mirroring the PyTorch forward."""
    B, H = hidden.shape
    T = output_history.shape[1]
    h_rep = jnp.broadcast_to(hidden[:, None, :], (B, T, H))
    cat = jnp.concatenate([h_rep, output_history], axis=2)
    energy = jnp.tanh(cat @ attn_weight.T + attn_bias)
    scores = (energy @ v_weight.T)[..., 0]                 # (B, T)
    attention = jax.nn.softmax(scores, axis=1)
    w = jnp.einsum("bt,bto->bo", attention, output_history)[:, None, :]
    return w, attention


def _make_problem(key, B, T, dec_O, output_dim):
    k1, k2, k3, k4, k5 = jax.random.split(key, 5)
    hidden = jax.random.normal(k1, (B, output_dim), dtype=jnp.float32)
    output_history = jax.random.normal(k2, (B, T, dec_O), dtype=jnp.float32)
    fan_attn = dec_O + output_dim
    bound_attn = 1.0 / (fan_attn ** 0.5)
    attn_weight = jax.random.uniform(k3, (dec_O, fan_attn), jnp.float32,
                                     -bound_attn, bound_attn)
    attn_bias = jax.random.uniform(k4, (dec_O,), jnp.float32,
                                   -bound_attn, bound_attn)
    bound_v = 1.0 / (dec_O ** 0.5)
    v_weight = jax.random.uniform(k5, (1, dec_O), jnp.float32, -bound_v, bound_v)
    return hidden, output_history, attn_weight, attn_bias, v_weight


if __name__ == "__main__":
    key = jax.random.PRNGKey(0)
    k_a, k_b = jax.random.split(key)
    dec_O, output_dim = 32, 32

    # 1) f32 operands, module-small shapes, auto block sizes (tight tolerance).
    B, T = 2, 8
    hidden, oh, aw, ab, vw = _make_problem(k_a, B, T, dec_O, output_dim)
    p32 = prepare_attention_params(aw, ab, vw, hidden_dim=output_dim,
                                   operand_dtype=jnp.float32)
    w, attn = attention_forward(hidden, oh, *p32)
    jax.block_until_ready((w, attn))
    w_ref, attn_ref = reference_forward(hidden, oh, aw, ab, vw)
    assert w.shape == (B, 1, dec_O) and attn.shape == (B, T)
    assert jnp.allclose(w, w_ref, atol=1e-4, rtol=1e-4)
    assert jnp.allclose(attn, attn_ref, atol=1e-4, rtol=1e-4)

    # 2) f32, forced small blocks: exercises batch/T padding, masking and the
    #    online-softmax T grid axis (tight tolerance).
    B, T = 20, 20
    hidden, oh, aw, ab, vw = _make_problem(k_b, B, T, dec_O, output_dim)
    p32 = prepare_attention_params(aw, ab, vw, hidden_dim=output_dim,
                                   operand_dtype=jnp.float32)
    w, attn = attention_forward(hidden, oh, *p32, block_b=8, block_t=8)
    jax.block_until_ready((w, attn))
    w_ref, attn_ref = reference_forward(hidden, oh, aw, ab, vw)
    assert w.shape == (B, 1, dec_O) and attn.shape == (B, T)
    assert jnp.allclose(w, w_ref, atol=1e-4, rtol=1e-4)
    assert jnp.allclose(attn, attn_ref, atol=1e-4, rtol=1e-4)

    # 3) bf16 operands (the HBM-bandwidth-bound production path), f32 accumulation.
    p16 = prepare_attention_params(aw, ab, vw, hidden_dim=output_dim,
                                   operand_dtype=jnp.bfloat16)
    w16, attn16 = attention_forward(hidden, oh, *p16, block_b=8)
    jax.block_until_ready((w16, attn16))
    # Tolerance reflects bf16 quantization of the operands only; accumulation,
    # tanh and softmax stay f32 in-kernel.
    assert jnp.allclose(w16, w_ref, atol=3e-2, rtol=5e-2)
    assert jnp.allclose(attn16, attn_ref, atol=3e-2, rtol=5e-2)

    print("KERNEL_OK")
</pallas_src>

<mosaic_0001>
module attributes {stable_mosaic.version = 11 : i64} {
  func.func @kernel(%arg0: i32, %arg1: i32, %arg2: memref<8x32xf32, #tpu.memory_space<vmem>>, %arg3: memref<8x8x32xf32, #tpu.memory_space<vmem>>, %arg4: memref<32x32xf32, #tpu.memory_space<vmem>>, %arg5: memref<32x32xf32, #tpu.memory_space<vmem>>, %arg6: memref<1x32xf32, #tpu.memory_space<vmem>>, %arg7: memref<1x32xf32, #tpu.memory_space<vmem>>, %arg8: memref<8x32xf32, #tpu.memory_space<vmem>>, %arg9: memref<8x8xf32, #tpu.memory_space<vmem>>, %arg10: memref<8x1xf32, #tpu.memory_space<vmem>>, %arg11: memref<8x1xf32, #tpu.memory_space<vmem>>, %arg12: memref<8x32xf32, #tpu.memory_space<vmem>>, %arg13: memref<1x8x8xf32, #tpu.memory_space<vmem>>) attributes {dimension_semantics = [#tpu.dimension_semantics<parallel>, #tpu.dimension_semantics<arbitrary>], iteration_bounds = array<i64: 1, 1>, scalar_prefetch = 0 : i64, scratch_operands = 4 : i64, tpu.core_type = #tpu.core_type<tc>, window_params = [{transform_indices = @transform_0, window_bounds = array<i64: 8, 32>}, {transform_indices = @transform_1, window_bounds = array<i64: 8, 8, 32>}, {pipeline_mode = #tpu.pipeline_mode<synchronous>, transform_indices = @transform_2, window_bounds = array<i64: 32, 32>}, {pipeline_mode = #tpu.pipeline_mode<synchronous>, transform_indices = @transform_3, window_bounds = array<i64: 32, 32>}, {pipeline_mode = #tpu.pipeline_mode<synchronous>, transform_indices = @transform_4, window_bounds = array<i64: 1, 32>}, {pipeline_mode = #tpu.pipeline_mode<synchronous>, transform_indices = @transform_5, window_bounds = array<i64: 1, 32>}, {transform_indices = @transform_6, window_bounds = array<i64: 8, 32>}, {transform_indices = @transform_7, window_bounds = array<i64: 8, 8>}]} {
    %c0_i32 = arith.constant 0 : i32
    %0 = arith.cmpi eq, %arg1, %c0_i32 : i32
    %1 = arith.extui %0 : i1 to i32
    %c0_i32_0 = arith.constant 0 : i32
    %2 = arith.cmpi ne, %1, %c0_i32_0 : i32
    scf.if %2 {
      %cst_34 = arith.constant -1.000000e+30 : f32
      %55 = vector.broadcast %cst_34 : f32 to vector<8x1xf32>
      %c0_35 = arith.constant 0 : index
      %c0_36 = arith.constant 0 : index
      %56 = vector.load %arg10[%c0_35, %c0_36] : memref<8x1xf32, #tpu.memory_space<vmem>>, vector<8x1xf32>
      tpu.vector_store %arg10[%c0_35, %c0_36], %55 {strides = array<i32>} : memref<8x1xf32, #tpu.memory_space<vmem>>, vector<8x1xf32>,
      %cst_37 = arith.constant 0.000000e+00 : f32
      %57 = vector.broadcast %cst_37 : f32 to vector<8x1xf32>
      %c0_38 = arith.constant 0 : index
      %c0_39 = arith.constant 0 : index
      %58 = vector.load %arg11[%c0_38, %c0_39] : memref<8x1xf32, #tpu.memory_space<vmem>>, vector<8x1xf32>
      tpu.vector_store %arg11[%c0_38, %c0_39], %57 {strides = array<i32>} : memref<8x1xf32, #tpu.memory_space<vmem>>, vector<8x1xf32>,
      %cst_40 = arith.constant 0.000000e+00 : f32
      %59 = vector.broadcast %cst_40 : f32 to vector<8x32xf32>
      %c0_41 = arith.constant 0 : index
      %c0_42 = arith.constant 0 : index
      %60 = vector.load %arg12[%c0_41, %c0_42] : memref<8x32xf32, #tpu.memory_space<vmem>>, vector<8x32xf32>
      tpu.vector_store %arg12[%c0_41, %c0_42], %59 {strides = array<i32>} : memref<8x32xf32, #tpu.memory_space<vmem>>, vector<8x32xf32>,
    } else {
    }
    %c0 = arith.constant 0 : index
    %c0_1 = arith.constant 0 : index
    %3 = vector.load %arg2[%c0, %c0_1] : memref<8x32xf32, #tpu.memory_space<vmem>>, vector<8x32xf32>
    %c0_2 = arith.constant 0 : index
    %c0_3 = arith.constant 0 : index
    %c0_4 = arith.constant 0 : index
    %4 = vector.load %arg3[%c0_2, %c0_3, %c0_4] : memref<8x8x32xf32, #tpu.memory_space<vmem>>, vector<8x8x32xf32>
    %c0_5 = arith.constant 0 : index
    %c0_6 = arith.constant 0 : index
    %5 = vector.load %arg4[%c0_5, %c0_6] : memref<32x32xf32, #tpu.memory_space<vmem>>, vector<32x32xf32>
    %cst = arith.constant dense<0.000000e+00> : vector<8x32xf32>
    %6 = tpu.matmul %3, %5, %cst {dimension_numbers = #tpu.dot_dimension_numbers<[1], [0], [0], [1], [0, 0, 1, 1], [], []>} : vector<8x32xf32>, vector<32x32xf32>, vector<8x32xf32> -> vector<8x32xf32>
    %c0_7 = arith.constant 0 : index
    %c0_8 = arith.constant 0 : index
    %7 = vector.load %arg6[%c0_7, %c0_8] : memref<1x32xf32, #tpu.memory_space<vmem>>, vector<1x32xf32>
    %8 = vector.broadcast %7 : vector<1x32xf32> to vector<8x32xf32>
    %9 = arith.addf %6, %8 : vector<8x32xf32>
    %10 = vector.shape_cast %4 : vector<8x8x32xf32> to vector<64x32xf32>
    %c0_9 = arith.constant 0 : index
    %c0_10 = arith.constant 0 : index
    %11 = vector.load %arg5[%c0_9, %c0_10] : memref<32x32xf32, #tpu.memory_space<vmem>>, vector<32x32xf32>
    %cst_11 = arith.constant dense<0.000000e+00> : vector<64x32xf32>
    %12 = tpu.matmul %10, %11, %cst_11 {dimension_numbers = #tpu.dot_dimension_numbers<[1], [0], [0], [1], [0, 0, 1, 1], [], []>} : vector<64x32xf32>, vector<32x32xf32>, vector<64x32xf32> -> vector<64x32xf32>
    %13 = vector.shape_cast %12 : vector<64x32xf32> to vector<8x8x32xf32>
    %14 = vector.shape_cast %9 : vector<8x32xf32> to vector<8x1x32xf32>
    %15 = vector.broadcast %14 : vector<8x1x32xf32> to vector<8x8x32xf32>
    %16 = arith.addf %13, %15 : vector<8x8x32xf32>
    %17 = math.tanh %16 : vector<8x8x32xf32>
    %c0_12 = arith.constant 0 : index
    %c0_13 = arith.constant 0 : index
    %18 = vector.load %arg7[%c0_12, %c0_13] : memref<1x32xf32, #tpu.memory_space<vmem>>, vector<1x32xf32>
    %19 = vector.shape_cast %18 : vector<1x32xf32> to vector<1x1x32xf32>
    %20 = vector.broadcast %19 : vector<1x1x32xf32> to vector<8x8x32xf32>
    %21 = arith.mulf %17, %20 : vector<8x8x32xf32>
    %cst_14 = arith.constant dense<0.000000e+00> : vector<8x8xf32>
    %22 = vector.multi_reduction <add>, %21, %cst_14 [2] : vector<8x8x32xf32> to vector<8x8xf32>
    %23 = arith.index_cast %arg1 : i32 to index
    %c0_15 = arith.constant 0 : index
    %c0_16 = arith.constant 0 : index
    %24 = vector.load %arg13[%23, %c0_15, %c0_16] : memref<1x8x8xf32, #tpu.memory_space<vmem>>, vector<1x8x8xf32>
    %25 = vector.shape_cast %24 : vector<1x8x8xf32> to vector<8x8xf32>
    %26 = vector.shape_cast %22 : vector<8x8xf32> to vector<1x8x8xf32>
    tpu.vector_store %arg13[%23, %c0_15, %c0_16], %26 {strides = array<i32>} : memref<1x8x8xf32, #tpu.memory_space<vmem>>, vector<1x8x8xf32>,
    %c0_17 = arith.constant 0 : index
    %c0_18 = arith.constant 0 : index
    %27 = vector.load %arg10[%c0_17, %c0_18] : memref<8x1xf32, #tpu.memory_space<vmem>>, vector<8x1xf32>
    %cst_19 = arith.constant dense<0xFF800000> : vector<8xf32>
    %28 = vector.multi_reduction <maximumf>, %22, %cst_19 [1] : vector<8x8xf32> to vector<8xf32>
    %29 = vector.shape_cast %28 : vector<8xf32> to vector<8x1xf32>
    %30 = arith.maximumf %27, %29 : vector<8x1xf32>
    %31 = arith.subf %27, %30 : vector<8x1xf32>
    %32 = math.exp %31 : vector<8x1xf32>
    %33 = vector.broadcast %30 : vector<8x1xf32> to vector<8x8xf32>
    %34 = arith.subf %22, %33 : vector<8x8xf32>
    %35 = math.exp %34 : vector<8x8xf32>
    %c0_20 = arith.constant 0 : index
    %c0_21 = arith.constant 0 : index
    %36 = vector.load %arg11[%c0_20, %c0_21] : memref<8x1xf32, #tpu.memory_space<vmem>>, vector<8x1xf32>
    %37 = arith.mulf %32, %36 : vector<8x1xf32>
    %cst_22 = arith.constant dense<0.000000e+00> : vector<8xf32>
    %38 = vector.multi_reduction <add>, %35, %cst_22 [1] : vector<8x8xf32> to vector<8xf32>
    %39 = vector.shape_cast %38 : vector<8xf32> to vector<8x1xf32>
    %40 = arith.addf %37, %39 : vector<8x1xf32>
    %c0_23 = arith.constant 0 : index
    %c0_24 = arith.constant 0 : index
    %41 = vector.load %arg11[%c0_23, %c0_24] : memref<8x1xf32, #tpu.memory_space<vmem>>, vector<8x1xf32>
    tpu.vector_store %arg11[%c0_23, %c0_24], %40 {strides = array<i32>} : memref<8x1xf32, #tpu.memory_space<vmem>>, vector<8x1xf32>,
    %42 = vector.shape_cast %35 : vector<8x8xf32> to vector<8x8x1xf32>
    %43 = vector.broadcast %42 : vector<8x8x1xf32> to vector<8x8x32xf32>
    %44 = arith.mulf %43, %4 : vector<8x8x32xf32>
    %cst_25 = arith.constant dense<0.000000e+00> : vector<8x32xf32>
    %45 = vector.multi_reduction <add>, %44, %cst_25 [1] : vector<8x8x32xf32> to vector<8x32xf32>
    %c0_26 = arith.constant 0 : index
    %c0_27 = arith.constant 0 : index
    %46 = vector.load %arg12[%c0_26, %c0_27] : memref<8x32xf32, #tpu.memory_space<vmem>>, vector<8x32xf32>
    %47 = vector.broadcast %32 : vector<8x1xf32> to vector<8x32xf32>
    %48 = arith.mulf %47, %46 : vector<8x32xf32>
    %49 = arith.addf %48, %45 : vector<8x32xf32>
    %c0_28 = arith.constant 0 : index
    %c0_29 = arith.constant 0 : index
    %50 = vector.load %arg12[%c0_28, %c0_29] : memref<8x32xf32, #tpu.memory_space<vmem>>, vector<8x32xf32>
    tpu.vector_store %arg12[%c0_28, %c0_29], %49 {strides = array<i32>} : memref<8x32xf32, #tpu.memory_space<vmem>>, vector<8x32xf32>,
    %c0_30 = arith.constant 0 : index
    %c0_31 = arith.constant 0 : index
    %51 = vector.load %arg10[%c0_30, %c0_31] : memref<8x1xf32, #tpu.memory_space<vmem>>, vector<8x1xf32>
    tpu.vector_store %arg10[%c0_30, %c0_31], %30 {strides = array<i32>} : memref<8x1xf32, #tpu.memory_space<vmem>>, vector<8x1xf32>,
    %c0_i32_32 = arith.constant 0 : i32
    %52 = arith.cmpi eq, %arg1, %c0_i32_32 : i32
    %53 = arith.extui %52 : i1 to i32
    %c0_i32_33 = arith.constant 0 : i32
    %54 = arith.cmpi ne, %53, %c0_i32_33 : i32
    scf.if %54 {
      %c0_34 = arith.constant 0 : index
      %c0_35 = arith.constant 0 : index
      %55 = vector.load %arg11[%c0_34, %c0_35] : memref<8x1xf32, #tpu.memory_space<vmem>>, vector<8x1xf32>
      %56 = tpu.reciprocal %55 {approx = true} : vector<8x1xf32> -> vector<8x1xf32>
      %57 = arith.mulf %55, %56 : vector<8x1xf32>
      %cst_36 = arith.constant 2.000000e+00 : f32
      %58 = vector.broadcast %cst_36 : f32 to vector<8x1xf32>
      %59 = arith.subf %58, %57 : vector<8x1xf32>
      %60 = arith.mulf %56, %59 : vector<8x1xf32>
      %c0_37 = arith.constant 0 : index
      %c0_38 = arith.constant 0 : index
      %61 = vector.load %arg12[%c0_37, %c0_38] : memref<8x32xf32, #tpu.memory_space<vmem>>, vector<8x32xf32>
      %62 = vector.broadcast %60 : vector<8x1xf32> to vector<8x32xf32>
      %63 = arith.mulf %61, %62 : vector<8x32xf32>
      %c0_39 = arith.constant 0 : index
      %c0_40 = arith.constant 0 : index
      %64 = vector.load %arg8[%c0_39, %c0_40] : memref<8x32xf32, #tpu.memory_space<vmem>>, vector<8x32xf32>
      tpu.vector_store %arg8[%c0_39, %c0_40], %63 {strides = array<i32>} : memref<8x32xf32, #tpu.memory_space<vmem>>, vector<8x32xf32>,
      %c0_41 = arith.constant 0 : index
      %c0_42 = arith.constant 0 : index
      %65 = vector.load %arg10[%c0_41, %c0_42] : memref<8x1xf32, #tpu.memory_space<vmem>>, vector<8x1xf32>
      %c0_43 = arith.constant 0 : index
      %c0_44 = arith.constant 0 : index
      %c0_45 = arith.constant 0 : index
      %66 = vector.load %arg13[%c0_43, %c0_44, %c0_45] : memref<1x8x8xf32, #tpu.memory_space<vmem>>, vector<1x8x8xf32>
      %67 = vector.shape_cast %66 : vector<1x8x8xf32> to vector<8x8xf32>
      %68 = vector.broadcast %65 : vector<8x1xf32> to vector<8x8xf32>
      %69 = arith.subf %67, %68 : vector<8x8xf32>
      %70 = math.exp %69 : vector<8x8xf32>
      %71 = vector.broadcast %60 : vector<8x1xf32> to vector<8x8xf32>
      %72 = arith.mulf %70, %71 : vector<8x8xf32>
      %c0_46 = arith.constant 0 : index
      %c0_47 = arith.constant 0 : index
      %73 = vector.load %arg9[%c0_46, %c0_47] : memref<8x8xf32, #tpu.memory_space<vmem>>, vector<8x8xf32>
      tpu.vector_store %arg9[%c0_46, %c0_47], %72 {strides = array<i32>} : memref<8x8xf32, #tpu.memory_space<vmem>>, vector<8x8xf32>,
    } else {
    }
    return
  }
  func.func @transform_0(%arg0: i32, %arg1: i32) -> (i32, i32) {
    %c0_i32 = arith.constant 0 : i32
    %c0_i32_0 = arith.constant 0 : i32
    return %arg0, %c0_i32 : i32, i32
  }
  func.func @transform_1(%arg0: i32, %arg1: i32) -> (i32, i32, i32) {
    %c0_i32 = arith.constant 0 : i32
    %c0_i32_0 = arith.constant 0 : i32
    return %arg0, %arg1, %c0_i32 : i32, i32, i32
  }
  func.func @transform_2(%arg0: i32, %arg1: i32) -> (i32, i32) {
    %c0_i32 = arith.constant 0 : i32
    %c0_i32_0 = arith.constant 0 : i32
    %c0_i32_1 = arith.constant 0 : i32
    return %c0_i32, %c0_i32_0 : i32, i32
  }
  func.func @transform_3(%arg0: i32, %arg1: i32) -> (i32, i32) {
    %c0_i32 = arith.constant 0 : i32
    %c0_i32_0 = arith.constant 0 : i32
    %c0_i32_1 = arith.constant 0 : i32
    return %c0_i32, %c0_i32_0 : i32, i32
  }
  func.func @transform_4(%arg0: i32, %arg1: i32) -> (i32, i32) {
    %c0_i32 = arith.constant 0 : i32
    %c0_i32_0 = arith.constant 0 : i32
    %c0_i32_1 = arith.constant 0 : i32
    return %c0_i32, %c0_i32_0 : i32, i32
  }
  func.func @transform_5(%arg0: i32, %arg1: i32) -> (i32, i32) {
    %c0_i32 = arith.constant 0 : i32
    %c0_i32_0 = arith.constant 0 : i32
    %c0_i32_1 = arith.constant 0 : i32
    return %c0_i32, %c0_i32_0 : i32, i32
  }
  func.func @transform_6(%arg0: i32, %arg1: i32) -> (i32, i32) {
    %c0_i32 = arith.constant 0 : i32
    %c0_i32_0 = arith.constant 0 : i32
    return %arg0, %c0_i32 : i32, i32
  }
  func.func @transform_7(%arg0: i32, %arg1: i32) -> (i32, i32) {
    %c0_i32 = arith.constant 0 : i32
    %c0_i32_0 = arith.constant 0 : i32
    return %arg0, %c0_i32 : i32, i32
  }
}

module attributes {stable_mosaic.version = 11 : i64} {
  func.func @kernel(%arg0: i32, %arg1: i32, %arg2: memref<8x32xf32, #tpu.memory_space<vmem>>, %arg3: memref<8x8x32xf32, #tpu.memory_space<vmem>>, %arg4: memref<32x32xf32, #tpu.memory_space<vmem>>, %arg5: memref<32x32xf32, #tpu.memory_space<vmem>>, %arg6: memref<1x32xf32, #tpu.memory_space<vmem>>, %arg7: memref<1x32xf32, #tpu.memory_space<vmem>>, %arg8: memref<8x32xf32, #tpu.memory_space<vmem>>, %arg9: memref<8x8xf32, #tpu.memory_space<vmem>>, %arg10: memref<8x1xf32, #tpu.memory_space<vmem>>, %arg11: memref<8x1xf32, #tpu.memory_space<vmem>>, %arg12: memref<8x32xf32, #tpu.memory_space<vmem>>, %arg13: memref<1x8x8xf32, #tpu.memory_space<vmem>>) attributes {dimension_semantics = [#tpu.dimension_semantics<parallel>, #tpu.dimension_semantics<arbitrary>], iteration_bounds = array<i64: 1, 1>, scalar_prefetch = 0 : i64, scratch_operands = 4 : i64, tpu.core_type = #tpu.core_type<tc>, window_params = [{transform_indices = @transform_0, window_bounds = array<i64: 8, 32>}, {transform_indices = @transform_1, window_bounds = array<i64: 8, 8, 32>}, {pipeline_mode = #tpu.pipeline_mode<synchronous>, transform_indices = @transform_2, window_bounds = array<i64: 32, 32>}, {pipeline_mode = #tpu.pipeline_mode<synchronous>, transform_indices = @transform_3, window_bounds = array<i64: 32, 32>}, {pipeline_mode = #tpu.pipeline_mode<synchronous>, transform_indices = @transform_4, window_bounds = array<i64: 1, 32>}, {pipeline_mode = #tpu.pipeline_mode<synchronous>, transform_indices = @transform_5, window_bounds = array<i64: 1, 32>}, {transform_indices = @transform_6, window_bounds = array<i64: 8, 32>}, {transform_indices = @transform_7, window_bounds = array<i64: 8, 8>}]} {
    %c0_i32 = arith.constant 0 : i32
    %0 = arith.cmpi eq, %arg1, %c0_i32 : i32
    %1 = arith.extui %0 : i1 to i32
    %c0_i32_0 = arith.constant 0 : i32
    %2 = arith.cmpi ne, %1, %c0_i32_0 : i32
    scf.if %2 {
      %cst_34 = arith.constant -1.000000e+30 : f32
      %55 = vector.broadcast %cst_34 : f32 to vector<8x1xf32>
      %c0_35 = arith.constant 0 : index
      %c0_36 = arith.constant 0 : index
      %56 = vector.load %arg10[%c0_35, %c0_36] : memref<8x1xf32, #tpu.memory_space<vmem>>, vector<8x1xf32>
      tpu.vector_store %arg10[%c0_35, %c0_36], %55 {strides = array<i32>} : memref<8x1xf32, #tpu.memory_space<vmem>>, vector<8x1xf32>,
      %cst_37 = arith.constant 0.000000e+00 : f32
      %57 = vector.broadcast %cst_37 : f32 to vector<8x1xf32>
      %c0_38 = arith.constant 0 : index
      %c0_39 = arith.constant 0 : index
      %58 = vector.load %arg11[%c0_38, %c0_39] : memref<8x1xf32, #tpu.memory_space<vmem>>, vector<8x1xf32>
      tpu.vector_store %arg11[%c0_38, %c0_39], %57 {strides = array<i32>} : memref<8x1xf32, #tpu.memory_space<vmem>>, vector<8x1xf32>,
      %cst_40 = arith.constant 0.000000e+00 : f32
      %59 = vector.broadcast %cst_40 : f32 to vector<8x32xf32>
      %c0_41 = arith.constant 0 : index
      %c0_42 = arith.constant 0 : index
      %60 = vector.load %arg12[%c0_41, %c0_42] : memref<8x32xf32, #tpu.memory_space<vmem>>, vector<8x32xf32>
      tpu.vector_store %arg12[%c0_41, %c0_42], %59 {strides = array<i32>} : memref<8x32xf32, #tpu.memory_space<vmem>>, vector<8x32xf32>,
    } else {
    }
    %c0 = arith.constant 0 : index
    %c0_1 = arith.constant 0 : index
    %3 = vector.load %arg2[%c0, %c0_1] : memref<8x32xf32, #tpu.memory_space<vmem>>, vector<8x32xf32>
    %c0_2 = arith.constant 0 : index
    %c0_3 = arith.constant 0 : index
    %c0_4 = arith.constant 0 : index
    %4 = vector.load %arg3[%c0_2, %c0_3, %c0_4] : memref<8x8x32xf32, #tpu.memory_space<vmem>>, vector<8x8x32xf32>
    %c0_5 = arith.constant 0 : index
    %c0_6 = arith.constant 0 : index
    %5 = vector.load %arg4[%c0_5, %c0_6] : memref<32x32xf32, #tpu.memory_space<vmem>>, vector<32x32xf32>
    %cst = arith.constant dense<0.000000e+00> : vector<8x32xf32>
    %6 = tpu.matmul %3, %5, %cst {dimension_numbers = #tpu.dot_dimension_numbers<[1], [0], [0], [1], [0, 0, 1, 1], [], []>} : vector<8x32xf32>, vector<32x32xf32>, vector<8x32xf32> -> vector<8x32xf32>
    %c0_7 = arith.constant 0 : index
    %c0_8 = arith.constant 0 : index
    %7 = vector.load %arg6[%c0_7, %c0_8] : memref<1x32xf32, #tpu.memory_space<vmem>>, vector<1x32xf32>
    %8 = vector.broadcast %7 : vector<1x32xf32> to vector<8x32xf32>
    %9 = arith.addf %6, %8 : vector<8x32xf32>
    %10 = vector.shape_cast %4 : vector<8x8x32xf32> to vector<64x32xf32>
    %c0_9 = arith.constant 0 : index
    %c0_10 = arith.constant 0 : index
    %11 = vector.load %arg5[%c0_9, %c0_10] : memref<32x32xf32, #tpu.memory_space<vmem>>, vector<32x32xf32>
    %cst_11 = arith.constant dense<0.000000e+00> : vector<64x32xf32>
    %12 = tpu.matmul %10, %11, %cst_11 {dimension_numbers = #tpu.dot_dimension_numbers<[1], [0], [0], [1], [0, 0, 1, 1], [], []>} : vector<64x32xf32>, vector<32x32xf32>, vector<64x32xf32> -> vector<64x32xf32>
    %13 = vector.shape_cast %12 : vector<64x32xf32> to vector<8x8x32xf32>
    %14 = vector.shape_cast %9 : vector<8x32xf32> to vector<8x1x32xf32>
    %15 = vector.broadcast %14 : vector<8x1x32xf32> to vector<8x8x32xf32>
    %16 = arith.addf %13, %15 : vector<8x8x32xf32>
    %17 = math.tanh %16 : vector<8x8x32xf32>
    %c0_12 = arith.constant 0 : index
    %c0_13 = arith.constant 0 : index
    %18 = vector.load %arg7[%c0_12, %c0_13] : memref<1x32xf32, #tpu.memory_space<vmem>>, vector<1x32xf32>
    %19 = vector.shape_cast %18 : vector<1x32xf32> to vector<1x1x32xf32>
    %20 = vector.broadcast %19 : vector<1x1x32xf32> to vector<8x8x32xf32>
    %21 = arith.mulf %17, %20 : vector<8x8x32xf32>
    %cst_14 = arith.constant dense<0.000000e+00> : vector<8x8xf32>
    %22 = vector.multi_reduction <add>, %21, %cst_14 [2] : vector<8x8x32xf32> to vector<8x8xf32>
    %23 = arith.index_cast %arg1 : i32 to index
    %c0_15 = arith.constant 0 : index
    %c0_16 = arith.constant 0 : index
    %24 = vector.load %arg13[%23, %c0_15, %c0_16] : memref<1x8x8xf32, #tpu.memory_space<vmem>>, vector<1x8x8xf32>
    %25 = vector.shape_cast %24 : vector<1x8x8xf32> to vector<8x8xf32>
    %26 = vector.shape_cast %22 : vector<8x8xf32> to vector<1x8x8xf32>
    tpu.vector_store %arg13[%23, %c0_15, %c0_16], %26 {strides = array<i32>} : memref<1x8x8xf32, #tpu.memory_space<vmem>>, vector<1x8x8xf32>,
    %c0_17 = arith.constant 0 : index
    %c0_18 = arith.constant 0 : index
    %27 = vector.load %arg10[%c0_17, %c0_18] : memref<8x1xf32, #tpu.memory_space<vmem>>, vector<8x1xf32>
    %cst_19 = arith.constant dense<0xFF800000> : vector<8xf32>
    %28 = vector.multi_reduction <maximumf>, %22, %cst_19 [1] : vector<8x8xf32> to vector<8xf32>
    %29 = vector.shape_cast %28 : vector<8xf32> to vector<8x1xf32>
    %30 = arith.maximumf %27, %29 : vector<8x1xf32>
    %31 = arith.subf %27, %30 : vector<8x1xf32>
    %32 = math.exp %31 : vector<8x1xf32>
    %33 = vector.broadcast %30 : vector<8x1xf32> to vector<8x8xf32>
    %34 = arith.subf %22, %33 : vector<8x8xf32>
    %35 = math.exp %34 : vector<8x8xf32>
    %c0_20 = arith.constant 0 : index
    %c0_21 = arith.constant 0 : index
    %36 = vector.load %arg11[%c0_20, %c0_21] : memref<8x1xf32, #tpu.memory_space<vmem>>, vector<8x1xf32>
    %37 = arith.mulf %32, %36 : vector<8x1xf32>
    %cst_22 = arith.constant dense<0.000000e+00> : vector<8xf32>
    %38 = vector.multi_reduction <add>, %35, %cst_22 [1] : vector<8x8xf32> to vector<8xf32>
    %39 = vector.shape_cast %38 : vector<8xf32> to vector<8x1xf32>
    %40 = arith.addf %37, %39 : vector<8x1xf32>
    %c0_23 = arith.constant 0 : index
    %c0_24 = arith.constant 0 : index
    %41 = vector.load %arg11[%c0_23, %c0_24] : memref<8x1xf32, #tpu.memory_space<vmem>>, vector<8x1xf32>
    tpu.vector_store %arg11[%c0_23, %c0_24], %40 {strides = array<i32>} : memref<8x1xf32, #tpu.memory_space<vmem>>, vector<8x1xf32>,
    %42 = vector.shape_cast %35 : vector<8x8xf32> to vector<8x8x1xf32>
    %43 = vector.broadcast %42 : vector<8x8x1xf32> to vector<8x8x32xf32>
    %44 = arith.mulf %43, %4 : vector<8x8x32xf32>
    %cst_25 = arith.constant dense<0.000000e+00> : vector<8x32xf32>
    %45 = vector.multi_reduction <add>, %44, %cst_25 [1] : vector<8x8x32xf32> to vector<8x32xf32>
    %c0_26 = arith.constant 0 : index
    %c0_27 = arith.constant 0 : index
    %46 = vector.load %arg12[%c0_26, %c0_27] : memref<8x32xf32, #tpu.memory_space<vmem>>, vector<8x32xf32>
    %47 = vector.broadcast %32 : vector<8x1xf32> to vector<8x32xf32>
    %48 = arith.mulf %47, %46 : vector<8x32xf32>
    %49 = arith.addf %48, %45 : vector<8x32xf32>
    %c0_28 = arith.constant 0 : index
    %c0_29 = arith.constant 0 : index
    %50 = vector.load %arg12[%c0_28, %c0_29] : memref<8x32xf32, #tpu.memory_space<vmem>>, vector<8x32xf32>
    tpu.vector_store %arg12[%c0_28, %c0_29], %49 {strides = array<i32>} : memref<8x32xf32, #tpu.memory_space<vmem>>, vector<8x32xf32>,
    %c0_30 = arith.constant 0 : index
    %c0_31 = arith.constant 0 : index
    %51 = vector.load %arg10[%c0_30, %c0_31] : memref<8x1xf32, #tpu.memory_space<vmem>>, vector<8x1xf32>
    tpu.vector_store %arg10[%c0_30, %c0_31], %30 {strides = array<i32>} : memref<8x1xf32, #tpu.memory_space<vmem>>, vector<8x1xf32>,
    %c0_i32_32 = arith.constant 0 : i32
    %52 = arith.cmpi eq, %arg1, %c0_i32_32 : i32
    %53 = arith.extui %52 : i1 to i32
    %c0_i32_33 = arith.constant 0 : i32
    %54 = arith.cmpi ne, %53, %c0_i32_33 : i32
    scf.if %54 {
      %c0_34 = arith.constant 0 : index
      %c0_35 = arith.constant 0 : index
      %55 = vector.load %arg11[%c0_34, %c0_35] : memref<8x1xf32, #tpu.memory_space<vmem>>, vector<8x1xf32>
      %56 = tpu.reciprocal %55 {approx = true} : vector<8x1xf32> -> vector<8x1xf32>
      %57 = arith.mulf %55, %56 : vector<8x1xf32>
      %cst_36 = arith.constant 2.000000e+00 : f32
      %58 = vector.broadcast %cst_36 : f32 to vector<8x1xf32>
      %59 = arith.subf %58, %57 : vector<8x1xf32>
      %60 = arith.mulf %56, %59 : vector<8x1xf32>
      %c0_37 = arith.constant 0 : index
      %c0_38 = arith.constant 0 : index
      %61 = vector.load %arg12[%c0_37, %c0_38] : memref<8x32xf32, #tpu.memory_space<vmem>>, vector<8x32xf32>
      %62 = vector.broadcast %60 : vector<8x1xf32> to vector<8x32xf32>
      %63 = arith.mulf %61, %62 : vector<8x32xf32>
      %c0_39 = arith.constant 0 : index
      %c0_40 = arith.constant 0 : index
      %64 = vector.load %arg8[%c0_39, %c0_40] : memref<8x32xf32, #tpu.memory_space<vmem>>, vector<8x32xf32>
      tpu.vector_store %arg8[%c0_39, %c0_40], %63 {strides = array<i32>} : memref<8x32xf32, #tpu.memory_space<vmem>>, vector<8x32xf32>,
      %c0_41 = arith.constant 0 : index
      %c0_42 = arith.constant 0 : index
      %65 = vector.load %arg10[%c0_41, %c0_42] : memref<8x1xf32, #tpu.memory_space<vmem>>, vector<8x1xf32>
      %c0_43 = arith.constant 0 : index
      %c0_44 = arith.constant 0 : index
      %c0_45 = arith.constant 0 : index
      %66 = vector.load %arg13[%c0_43, %c0_44, %c0_45] : memref<1x8x8xf32, #tpu.memory_space<vmem>>, vector<1x8x8xf32>
      %67 = vector.shape_cast %66 : vector<1x8x8xf32> to vector<8x8xf32>
      %68 = vector.broadcast %65 : vector<8x1xf32> to vector<8x8xf32>
      %69 = arith.subf %67, %68 : vector<8x8xf32>
      %70 = math.exp %69 : vector<8x8xf32>
      %71 = vector.broadcast %60 : vector<8x1xf32> to vector<8x8xf32>
      %72 = arith.mulf %70, %71 : vector<8x8xf32>
      %c0_46 = arith.constant 0 : index
      %c0_47 = arith.constant 0 : index
      %73 = vector.load %arg9[%c0_46, %c0_47] : memref<8x8xf32, #tpu.memory_space<vmem>>, vector<8x8xf32>
      tpu.vector_store %arg9[%c0_46, %c0_47], %72 {strides = array<i32>} : memref<8x8xf32, #tpu.memory_space<vmem>>, vector<8x8xf32>,
    } else {
    }
    return
  }
  func.func @transform_0(%arg0: i32, %arg1: i32) -> (i32, i32) {
    %c0_i32 = arith.constant 0 : i32
    %c0_i32_0 = arith.constant 0 : i32
    return %arg0, %c0_i32 : i32, i32
  }
  func.func @transform_1(%arg0: i32, %arg1: i32) -> (i32, i32, i32) {
    %c0_i32 = arith.constant 0 : i32
    %c0_i32_0 = arith.constant 0 : i32
    return %arg0, %arg1, %c0_i32 : i32, i32, i32
  }
  func.func @transform_2(%arg0: i32, %arg1: i32) -> (i32, i32) {
    %c0_i32 = arith.constant 0 : i32
    %c0_i32_0 = arith.constant 0 : i32
    %c0_i32_1 = arith.constant 0 : i32
    return %c0_i32, %c0_i32_0 : i32, i32
  }
  func.func @transform_3(%arg0: i32, %arg1: i32) -> (i32, i32) {
    %c0_i32 = arith.constant 0 : i32
    %c0_i32_0 = arith.constant 0 : i32
    %c0_i32_1 = arith.constant 0 : i32
    return %c0_i32, %c0_i32_0 : i32, i32
  }
  func.func @transform_4(%arg0: i32, %arg1: i32) -> (i32, i32) {
    %c0_i32 = arith.constant 0 : i32
    %c0_i32_0 = arith.constant 0 : i32
    %c0_i32_1 = arith.constant 0 : i32
    return %c0_i32, %c0_i32_0 : i32, i32
  }
  func.func @transform_5(%arg0: i32, %arg1: i32) -> (i32, i32) {
    %c0_i32 = arith.constant 0 : i32
    %c0_i32_0 = arith.constant 0 : i32
    %c0_i32_1 = arith.constant 0 : i32
    return %c0_i32, %c0_i32_0 : i32, i32
  }
  func.func @transform_6(%arg0: i32, %arg1: i32) -> (i32, i32) {
    %c0_i32 = arith.constant 0 : i32
    %c0_i32_0 = arith.constant 0 : i32
    return %arg0, %c0_i32 : i32, i32
  }
  func.func @transform_7(%arg0: i32, %arg1: i32) -> (i32, i32) {
    %c0_i32 = arith.constant 0 : i32
    %c0_i32_0 = arith.constant 0 : i32
    return %arg0, %c0_i32 : i32, i32
  }
}

</mosaic_0001>

<bundles_post_ra>
// kernel: tpu_custom_call.1
= control target key start
LH: loop header
LB: loop body
LE: loop exit
PB: predicated region body
PF: predicated region fallthrough
CT: control target
= control target key end

     0   :  { %13 = vsyncpa [#allocation7], 0  ;;  %s1397_s0 = inlined_call_operand.hbm [shape: f32[8,32], index: 0, kind: input, shape index: {}]   ;;  %s1398_s1 = inlined_call_operand.hbm [shape: f32[8,8,32], index: 1, kind: input, shape index: {}]   ;;  %s1399_s2 = inlined_call_operand.hbm [shape: f32[32,32], index: 2, kind: input, shape index: {}]   ;;  %s1400_s3 = inlined_call_operand.hbm [shape: f32[32,32], index: 3, kind: input, shape index: {}]   ;;  %s1401_s4 = inlined_call_operand.vmem [shape: f32[1,32], index: 4, kind: input, shape index: {}]   ;;  %s1402_s5 = inlined_call_operand.vmem [shape: f32[1,32], index: 5, kind: input, shape index: {}]   ;;  %s1403_s6 = inlined_call_operand.hbm [shape: f32[8,32], index: 6, kind: output, shape index: {0}]   ;;  %s1404_s7 = inlined_call_operand.hbm [shape: f32[8,8], index: 7, kind: output, shape index: {1}]  }
   0x1   :  { %14 = vsyncpa [#allocation10], 0 }
   0x2   :  { %15 = vsyncpa [#allocation13], 0 }
   0x3   :  { %16 = vsyncpa [#allocation8], 0 }
   0x4   :  { %17 = vsyncpa [#allocation16], 0  ;;  %s1108_s24 = smov [#allocation9]   ;;  %s966_s28 = scalar_lea.hbm %s1398_s1, 1024 }
   0x5   :  { %s33_s25 = sshll.u32 %s1108_s24, 4  ;;  %p967_p0 = scmp.ne.s32.totalorder %s1398_s1, %s966_s28  ;;  %s34_s25 = int_to_ptr.vmem [resolvable:$true] %s33_s25 }
   0x6   :  { %p970_p1 = scmp.lt.u32.totalorder %s966_s28, %s1398_s1 }
   0x8   :  { %p972_p2 = pnand %p970_p1, %p967_p0 }
   0xa   :  { %975 = shalt.err (!%p972_p2)
}
   0xb   :  { %s976_s10 = scalar_lea.vmem %s34_s25, 1024  ;;  %p981_p4 = scmp.lt.s32.totalorder %s34_s25, %s34_s25 }
   0xc   :  { %p977_p3 = scmp.ne.s32.totalorder %s34_s25, %s976_s10  ;;  %p982_p5 = scmp.lt.s32.totalorder %s976_s10, %s976_s10 }
   0xe   :  { %p983_p6 = por %p982_p5, %p981_p4 }
  0x10   :  { %p984_p7 = pnand %p983_p6, %p977_p3 }
  0x12   :  { %987 = shalt.err (!%p984_p7)
}
  0x13   :  { %s1109_s11 = smov 128   ;;  %s1110_s12 = smov 8  }
  0x14   :  { %39 = dma.hbm_to_vmem [thread:$0]  %s1398_s1, 1024, %s34_s25, [#allocation10], %s1109_s11, %s1109_s11, %s1110_s12  }
  0x15   :  { %s1111_s15 = smov [#allocation6]   ;;  %s1112_s17 = smov [#allocation11]  }
  0x16   :  { %s24_s16 = sshll.u32 %s1111_s15, 4  ;;  %s45_s18 = sshll.u32 %s1112_s17, 4  ;;  %s25_s16 = int_to_ptr.vmem [resolvable:$true] %s24_s16  ;;  %s46_s18 = int_to_ptr.vmem [resolvable:$true] %s45_s18 }
  0x17   :  { %s988_s21 = scalar_lea.hbm %s1397_s0, 128 }
  0x18   :  { %p989_p8 = scmp.ne.s32.totalorder %s1397_s0, %s988_s21  ;;  %p992_p9 = scmp.lt.u32.totalorder %s988_s21, %s1397_s0 }
  0x1a   :  { %p994_p10 = pnand %p992_p9, %p989_p8 }
  0x1c   :  { %997 = shalt.err (!%p994_p10)
}
  0x1d   :  { %s998_s1 = scalar_lea.vmem %s25_s16, 128  ;;  %p1003_p12 = scmp.lt.s32.totalorder %s25_s16, %s25_s16 }
  0x1e   :  { %p999_p11 = scmp.ne.s32.totalorder %s25_s16, %s998_s1  ;;  %p1004_p13 = scmp.lt.s32.totalorder %s998_s1, %s998_s1 }
  0x20   :  { %p1005_p0 = por %p1004_p13, %p1003_p12 }
  0x22   :  { %p1006_p1 = pnand %p1005_p0, %p999_p11 }
  0x24   :  { %1009 = shalt.err (!%p1006_p1)
}
  0x25   :  { %27 = dma.hbm_to_vmem [thread:$0]  %s1397_s0, 128, %s25_s16, [#allocation7]  }
  0x26   :  { %s1010_s30 = scalar_lea.hbm %s1399_s2, 512 }
  0x27   :  { %p1011_p2 = scmp.ne.s32.totalorder %s1399_s2, %s1010_s30  ;;  %p1014_p3 = scmp.lt.u32.totalorder %s1010_s30, %s1399_s2 }
  0x29   :  { %p1016_p4 = pnand %p1014_p3, %p1011_p2 }
  0x2b   :  { %1019 = shalt.err (!%p1016_p4)
}
  0x2c   :  { %s1020_s14 = scalar_lea.vmem %s46_s18, 512  ;;  %p1025_p6 = scmp.lt.s32.totalorder %s46_s18, %s46_s18 }
  0x2d   :  { %p1021_p5 = scmp.ne.s32.totalorder %s46_s18, %s1020_s14  ;;  %p1026_p7 = scmp.lt.s32.totalorder %s1020_s14, %s1020_s14 }
  0x2f   :  { %p1027_p8 = por %p1026_p7, %p1025_p6 }
  0x31   :  { %p1028_p9 = pnand %p1027_p8, %p1021_p5 }
  0x33   :  { %1031 = shalt.err (!%p1028_p9)
}
  0x34   :  { %51 = dma.hbm_to_vmem [thread:$0]  %s1399_s2, 512, %s46_s18, [#allocation10], %s1109_s11, %s1109_s11, %s1110_s12  }
  0x35   :  { %s1113_s16 = smov [#allocation12]   ;;  %s1032_s21 = scalar_lea.hbm %s1400_s3, 512 }
  0x36   :  { %s57_s17 = sshll.u32 %s1113_s16, 4  ;;  %p1033_p10 = scmp.ne.s32.totalorder %s1400_s3, %s1032_s21  ;;  %s58_s17 = int_to_ptr.vmem [resolvable:$true] %s57_s17 }
  0x37   :  { %p1036_p11 = scmp.lt.u32.totalorder %s1032_s21, %s1400_s3 }
  0x39   :  { %p1038_p12 = pnand %p1036_p11, %p1033_p10 }
  0x3b   :  { %1041 = shalt.err (!%p1038_p12)
}
  0x3c   :  { %s1042_s1 = scalar_lea.vmem %s58_s17, 512  ;;  %p1047_p0 = scmp.lt.s32.totalorder %s58_s17, %s58_s17 }
  0x3d   :  { %p1043_p13 = scmp.ne.s32.totalorder %s58_s17, %s1042_s1  ;;  %p1048_p1 = scmp.lt.s32.totalorder %s1042_s1, %s1042_s1 }
  0x3f   :  { %p1049_p2 = por %p1048_p1, %p1047_p0 }
  0x41   :  { %p1050_p3 = pnand %p1049_p2, %p1043_p13 }
  0x43   :  { %1053 = shalt.err (!%p1050_p3)
}
  0x44   :  { %63 = dma.hbm_to_vmem [thread:$0]  %s1400_s3, 512, %s58_s17, [#allocation13], %s1109_s11, %s1109_s11, %s1110_s12  }
  0x45   :  { %1098 = dma.done.wait [#allocation7], 128  }
  0x46   :  { %1099 = vsyncadd [#allocation7], 4294967168 }
  0x47   :  { %1100 = dma.done.wait [#allocation10], 1536  }
  0x48   :  { %1101 = vsyncadd [#allocation10], 4294965760 }
  0x49   :  { %1102 = dma.done.wait [#allocation13], 512  }
  0x4a   :  { %1103 = vsyncadd [#allocation13], 4294966784  ;;  %vm84_vm0 = vcmask 7168   ;;  %v1114_v0 = vmov 0.0|0.0   ;;  %v1115_v1 = vmov -1e+30   ;;  %v321_v26 = vlaneseq }
  0x4b   :  { %894 = vmatprep.subr.bf16.mxu0 %v1114_v0  ;;  %85 = vst.msk [vmem:[#allocation2] sm:$0xff] %vm84_vm0, %v1115_v1  ;;  %vm87_vm1 = vcmask 261120   ;;  %v1116_v2 = vmov 0.0   ;;  %vm1117_vm2 = vmmov 0   ;;  %v98_v3 = vld [vmem:[#allocation11] sm:$0xff]  ;;  %v99_v4 = vld [vmem:[#allocation11 + $0x8] sm:$0xff] }
  0x4c   :  { %86 = vst.msk [vmem:[#allocation3] sm:$0xff] %vm84_vm0, %v1116_v2  ;;  %871 = vmatprep.mubr.msk.f32.mxu0 %vm1117_vm2, %v1116_v2  ;;  %v183_v5 = vld [vmem:[#allocation12] sm:$0xff]  ;;  %v895_v6 = vpack.c.bf16 %v99_v4, %v98_v3  ;;  %v184_v7 = vld [vmem:[#allocation12 + $0x8] sm:$0xff]  ;;  %v100_v8 = vld [vmem:[#allocation11 + $0x10] sm:$0xff]  ;;  %v1118_v24 = vmov 1966171168  }
  0x4d   :  { %88 = vst.msk [vmem:[#allocation4] sm:$0xff] %vm87_vm1, %v1116_v2  ;;  %v101_v9 = vld [vmem:[#allocation11 + $0x18] sm:$0xff]  ;;  %v900_v10 = vpack.c.bf16 %v184_v7, %v183_v5  ;;  %v185_v11 = vld [vmem:[#allocation12 + $0x10] sm:$0xff]  ;;  %v1226_v17 = vld [vmem:[#allocation9] sm:$0xff]  ;;  %v319_v25 = vunpack.c.l.s4 %v1118_v24  ;;  %v1256_v28 = vshrl.u32 %v321_v26, 7  ;;  %vm503_vm3 = vcmask 1041409  }
  0x4e   :  { %v186_v12 = vld [vmem:[#allocation12 + $0x18] sm:$0xff]  ;;  %896 = vmatpush3.bf16.msra.mxu0 %v895_v6  ;;  %v898_v13 = vpack.c.bf16 %v101_v9, %v100_v8  ;;  %v1222_v15 = vld [vmem:[#allocation9 + $0x10] sm:$0xff]  ;;  %v1231_v19 = vld [vmem:[#allocation9 + $0x20] sm:$0xff]  ;;  %vm505_vm4 = vcmask 1042434   ;;  %vm507_vm5 = vcmask 1043459   ;;  %vm509_vm6 = vcmask 1044484  }
  0x4f   :  { %v904_v14 = vpack.c.bf16 %v186_v12, %v185_v11  ;;  %908 = vmatprep.subr.bf16.mxu1 %v900_v10  ;;  %897 = vmatprep.subr.bf16.mxu0 %v1114_v0  ;;  %v89_v16 = vld [vmem:[#allocation6] sm:$0xff]  ;;  %v1239_v20 = vld [vmem:[#allocation9 + $0x28] sm:$0xff]  ;;  %v1241_v21 = vld [vmem:[#allocation9 + $0x30] sm:$0xff]  ;;  %v320_v27 = vunpack.c.0.s8 %v319_v25  ;;  %v1263_v37 = vsub.s32 0, %v1256_v28  ;;  %vm511_vm7 = vcmask 1045509   ;;  %s1121_s27 = smov [#allocation15]  }
  0x50   :  { %910 = vmatpush3.bf16.msra.mxu1 %v900_v10  ;;  %885 = vmatprep.mubr.msk.f32.mxu1 %vm87_vm1, %v1222_v15  ;;  %v1228_v18 = vld [vmem:[#allocation9 + $0x18] sm:$0xff]  ;;  %v1243_v22 = vld [vmem:[#allocation9 + $0x8] sm:$0xff]  ;;  %vm513_vm8 = vcmask 1046534   ;;  %vm515_vm9 = vcmask 1047559   ;;  %vm520_vm10 = vcmask 64512   ;;  %s820_s28 = sshll.u32 %s1121_s27, 4  ;;  %s821_s28 = int_to_ptr.vmem [resolvable:$true] %s820_s28 }
  0x51   :  { %909 = vmatprep.subr.bf16.mxu1 %v904_v14  ;;  %v1249_v23 = vld [vmem:[#allocation9 + $0x38] sm:$0xff]  ;;  %v323_v30 = vsub.s32 %v320_v27, %v1256_v28 }
  0x52   :  { %899 = vmatpush3.bf16.msra.mxu0 %v898_v13  ;;  %v835_v29 = vld [vmem:[%s1401_s4] ss:$0 sm:$0xff] }
  0x53   :  { %901 = vmatprep.subr.bf16.mxu0 %v900_v10  ;;  %v845_v8 = vld [vmem:[%s1402_s5] ss:$0 sm:$0xff]  ;;  %s1120_s5 = smov [#allocation14]  }
  0x54   :  { %911 = vmatpush3.bf16.msra.mxu1 %v904_v14  ;;  %s810_s25 = sshll.u32 %s1120_s5, 4  ;;  %s811_s25 = int_to_ptr.vmem [resolvable:$true] %s810_s25 }
  0x55   :  { %872 = vmatmul.mubr.msk.f32.vlgmr.msra.gmra.mrb[0].mxu0 %vm87_vm1, %v89_v16  ;;  %s1054_s29 = scalar_lea.vmem %s811_s25, 128  ;;  %p1059_p5 = scmp.lt.s32.totalorder %s811_s25, %s811_s25 }
  0x56   :  { %903 = vmatpush3.bf16.msra.mxu0 %v900_v10  ;;  %882 = vmatprep.mubr.msk.f32.mxu0 %vm87_vm1, %v1226_v17  ;;  %p1055_p4 = scmp.ne.s32.totalorder %s811_s25, %s1054_s29  ;;  %p1060_p6 = scmp.lt.s32.totalorder %s1054_s29, %s1054_s29 }
  0x57   :  { %886 = vmatmul.mubr.msk.f32.vlgmr.msra.gmra.mrb[0].mxu1 %vm87_vm1, %v1228_v18  ;;  %905 = vmatprep.subr.bf16.mxu0 %v904_v14 }
  0x58   :  { %888 = vmatprep.mubr.msk.f32.mxu1 %vm87_vm1, %v1231_v19  ;;  %p1061_p7 = por %p1060_p6, %p1059_p5 }
  0x5a   :  { %907 = vmatpush3.bf16.msra.mxu0 %v904_v14  ;;  %p1062_p8 = pnand %p1061_p7, %p1055_p4 }
  0x5b   :  { %889 = vmatmul.mubr.msk.f32.gmra.mrb[2].mxu1 %vm87_vm1, %v1239_v20 }
  0x5c   :  { %891 = vmatprep.mubr.msk.f32.mxu1 %vm87_vm1, %v1241_v21 }
  0x5d   :  { %883 = vmatmul.mubr.msk.f32.vlgmr.msra.gmra.mrb[2].mxu0 %vm87_vm1, %v1243_v22 }
  0x5f   :  { %892 = vmatmul.mubr.msk.f32.gmra.mrb[4].mxu1 %vm87_vm1, %v1249_v23 }
 0x128   :  { %v179_v31 = vpop.f32.mrb[0].mxu0 }
 0x129   :  { %v180_v32 = vadd.f32 %v835_v29, %v179_v31  ;;  %v873_v33 = vpop.f32.mrb[1].mxu0 }
 0x12a   :  { %v887_v34 = vpop.f32.mrb[0].mxu1 }
 0x12b   :  { %v317_v35 = vcombine.high %v180_v32, %v180_v32  ;;  %v324_v36 = vrot.slane %v180_v32, %v323_v30  ;;  %v287_v38 = vpop.f32.mrb[1].mxu1 }
 0x12d   :  { %v331_v39 = vrot.slane %v317_v35, %v323_v30  ;;  %v332_v40 = vcombine.high %v324_v36, %v324_v36  ;;  %v340_v41 = vrot.slane %v324_v36, %v323_v30 }
 0x12e   :  { %v890_v42 = vpop.f32.mrb[2].mxu1 }
 0x12f   :  { %v354_v43 = vrot.slane %v332_v40, %v323_v30  ;;  %v362_v44 = vcombine.high %v340_v41, %v340_v41  ;;  %v369_v45 = vrot.slane %v340_v41, %v1263_v37  ;;  %v333_v46 = vcombine.high %v331_v39, %v331_v39  ;;  %v297_v47 = vpop.f32.mrb[3].mxu1 }
 0x130   :  { %v884_v48 = vpop.f32.mrb[2].mxu0  ;;  %v347_v49 = vrot.slane %v331_v39, %v323_v30 }
 0x131   :  { %v364_v50 = vcombine.high %v354_v43, %v354_v43  ;;  %v373_v51 = vrot.slane %v354_v43, %v1263_v37  ;;  %v377_v52 = vrot.slane %v362_v44, %v1263_v37  ;;  %v277_v53 = vpop.f32.mrb[3].mxu0  ;;  %v361_v54 = vrot.slane %v333_v46, %v323_v30 }
 0x132   :  { %v406_v55 = vadd.f32 %v369_v45, %v277_v53  ;;  %v385_v56 = vrot.slane %v347_v49, %v1263_v37  ;;  %v893_v57 = vpop.f32.mrb[4].mxu1  ;;  %v363_v58 = vcombine.high %v347_v49, %v347_v49  ;;  %v470_v44 = vand.u32 127, %v321_v26 }
 0x133   :  { %v381_v59 = vrot.slane %v364_v50, %v1263_v37  ;;  %v407_v60 = vadd.f32 %v884_v48, %v373_v51  ;;  %v408_v61 = vadd.f32 %v377_v52, %v287_v38  ;;  %v389_v62 = vrot.slane %v361_v54, %v1263_v37  ;;  %v307_v63 = vpop.f32.mrb[5].mxu1 }
 0x134   :  { %928 = vtanh.f32 %v406_v55  ;;  %v410_v0 = vadd.f32 %v385_v56, %v297_v47  ;;  %v365_v1 = vcombine.high %v361_v54, %v361_v54  ;;  %v393_v2 = vrot.slane %v363_v58, %v1263_v37 }
 0x135   :  { %v409_v3 = vadd.f32 %v887_v34, %v381_v59  ;;  %930 = vtanh.f32 %v407_v60  ;;  %v411_v4 = vadd.f32 %v890_v42, %v389_v62  ;;  %v1286_v46 = vsub.s32 %v470_v44, %v1256_v28 }
 0x136   :  { %932 = vtanh.f32 %v408_v61  ;;  %v397_v5 = vrot.slane %v365_v1, %v1263_v37  ;;  %v412_v6 = vadd.f32 %v393_v2, %v307_v63 }
 0x137   :  { %934 = vtanh.f32 %v409_v3 }
 0x138   :  { %v413_v7 = vadd.f32 %v893_v57, %v397_v5  ;;  %936 = vtanh.f32 %v410_v0  ;;  %v1119_v5 = vmov 0  }
 0x139   :  { %938 = vtanh.f32 %v411_v4  ;;  %926 = vset.pattern.permute.xlu1 %v1119_v5  ;;  %927 = vset.pattern.permute.xlu0 %v1119_v5 }
 0x13a   :  { %940 = vtanh.f32 %v412_v6  ;;  %v522_v6 = vld [vmem:[#allocation2] sm:$0xff] }
 0x13b   :  { %942 = vtanh.f32 %v413_v7 }
 0x13e   :  { %v929_v9 = vpop.eup %928 }
 0x13f   :  { %v931_v10 = vpop.eup %930  ;;  %v429_v11 = vmul.f32 %v929_v9, %v845_v8 }
 0x140   :  { %v933_v12 = vpop.eup %932  ;;  %v430_v24 = vmul.f32 %v931_v10, %v845_v8  ;;  %v540_v10 = vsub.s32 1, %v1256_v28 }
 0x141   :  { %v935_v13 = vpop.eup %934  ;;  %v437_v14 = vsel %vm87_vm1, %v429_v11, 0.0  ;;  %v431_v16 = vmul.f32 %v933_v12, %v845_v8  ;;  %v544_v11 = vsub.s32 2, %v1256_v28  ;;  %v548_v12 = vsub.s32 3, %v1256_v28 }
 0x142   :  { %438 = vadd.xlane.f32.xlu0 %v437_v14  ;;  %v937_v25 = vpop.eup %936  ;;  %v432_v29 = vmul.f32 %v935_v13, %v845_v8  ;;  %v440_v31 = vsel %vm87_vm1, %v430_v24, 0.0 }
 0x143   :  { %v443_v27 = vsel %vm87_vm1, %v431_v16, 0.0  ;;  %v939_v30 = vpop.eup %938  ;;  %v433_v32 = vmul.f32 %v937_v25, %v845_v8 }
 0x144   :  { %444 = vadd.xlane.f32.xlu1 %v443_v27  ;;  %v941_v33 = vpop.eup %940  ;;  %v446_v34 = vsel %vm87_vm1, %v432_v29, 0.0  ;;  %v434_v35 = vmul.f32 %v939_v30, %v845_v8  ;;  %v552_v29 = vsub.s32 4, %v1256_v28 }
 0x145   :  { %v943_v36 = vpop.eup %942  ;;  %v449_v38 = vsel %vm87_vm1, %v433_v32, 0.0  ;;  %v435_v39 = vmul.f32 %v941_v33, %v845_v8 }
 0x146   :  { %441 = vadd.xlane.f32.xlu0 %v440_v31  ;;  %v452_v40 = vsel %vm87_vm1, %v434_v35, 0.0  ;;  %v436_v41 = vmul.f32 %v943_v36, %v845_v8 }
 0x147   :  { %v455_v42 = vsel %vm87_vm1, %v435_v39, 0.0 }
 0x148   :  { %447 = vadd.xlane.f32.xlu1 %v446_v34  ;;  %v458_v43 = vsel %vm87_vm1, %v436_v41, 0.0  ;;  %v556_v34 = vsub.s32 5, %v1256_v28 }
 0x14a   :  { %450 = vadd.xlane.f32.xlu0 %v449_v38 }
 0x14c   :  { %453 = vadd.xlane.f32.xlu1 %v452_v40 }
 0x14e   :  { %456 = vadd.xlane.f32.xlu0 %v455_v42 }
 0x150   :  { %459 = vadd.xlane.f32.xlu1 %v458_v43  ;;  %v564_v43 = vsub.s32 7, %v1256_v28 }
 0x1cf   :  { %v439_v45 = vpop.xlane.xlu0 %438 }
 0x1d0   :  { %v474_v49 = vrot.slane %v439_v45, %v1286_v46 }
 0x1d1   :  { %v445_v47 = vpop.xlane.xlu1 %444 }
 0x1d2   :  { %v482_v51 = vrot.slane %v445_v47, %v1286_v46 }
 0x1d3   :  { %v442_v48 = vpop.xlane.xlu0 %441 }
 0x1d4   :  { %v478_v50 = vrot.slane %v442_v48, %v1286_v46 }
 0x1d5   :  { %v448_v52 = vpop.xlane.xlu1 %447 }
 0x1d6   :  { %v504_v53 = vsel %vm503_vm3, %v478_v50, %v474_v49  ;;  %v486_v26 = vrot.slane %v448_v52, %v1286_v46 }
 0x1d7   :  { %v506_v54 = vsel %vm505_vm4, %v482_v51, %v504_v53  ;;  %v451_v55 = vpop.xlane.xlu0 %450 }
 0x1d8   :  { %v508_v56 = vsel %vm507_vm5, %v486_v26, %v506_v54  ;;  %v490_v57 = vrot.slane %v451_v55, %v1286_v46 }
 0x1d9   :  { %v1296_v58 = vpop.xlane.xlu1 %453 }
 0x1da   :  { %v510_v59 = vsel %vm509_vm6, %v490_v57, %v508_v56  ;;  %v494_v60 = vrot.slane %v1296_v58, %v1286_v46 }
 0x1db   :  { %v1301_v61 = vpop.xlane.xlu0 %456 }
 0x1dc   :  { %v498_v62 = vrot.slane %v1301_v61, %v1286_v46  ;;  %v512_v0 = vsel %vm511_vm7, %v494_v60, %v510_v59 }
 0x1dd   :  { %v1305_v63 = vpop.xlane.xlu1 %459 }
 0x1de   :  { %v502_v1 = vrot.slane %v1305_v63, %v1286_v46  ;;  %v514_v2 = vsel %vm513_vm8, %v498_v62, %v512_v0 }
 0x1e0   :  { %v516_v3 = vsel %vm515_vm9, %v502_v1, %v514_v2 }
 0x1e1   :  { %v523_v4 = vsel %vm520_vm10, %v516_v3, -inf  ;;  %521 = vst.msk [vmem:[#allocation5] sm:$0xff] %vm520_vm10, %v516_v3 }
 0x1e2   :  { %524 = vmax.xlane.f32.xlu0 %v523_v4 }
 0x26f   :  { %v525_v7 = vpop.xlane.xlu0 %524 }
 0x270   :  { %v526_v8 = vmax.f32 %v522_v6, %v525_v7 }
 0x272   :  { %v527_v9 = vsub.f32 %v522_v6, %v526_v8  ;;  %775 = vst.msk [vmem:[#allocation2] sm:$0xff] %vm84_vm0, %v526_v8  ;;  %532 = vperm.xlu1 %926, %v526_v8  }
 0x274   :  { %v528_v39 = vmul.f32 1.442695, %v527_v9 }
 0x279   :  { %v792_v53 = vld [vmem:[#allocation2] sm:$0xff] }
 0x2f1   :  { %v533_v13 = vpop.permute.xlu1 %532 }
 0x2f2   :  { %v537_v14 = vrot.slane %v533_v13, %v1263_v37  ;;  %v541_v16 = vrot.slane %v533_v13, %v540_v10  ;;  %v545_v24 = vrot.slane %v533_v13, %v544_v11  ;;  %v549_v30 = vrot.slane %v533_v13, %v548_v12 }
 0x2f3   :  { %v553_v35 = vrot.slane %v533_v13, %v552_v29  ;;  %v560_v37 = vsub.s32 6, %v1256_v28  ;;  %v557_v40 = vrot.slane %v533_v13, %v556_v34  ;;  %v565_v50 = vrot.slane %v533_v13, %v564_v43 }
 0x2f4   :  { %v574_v25 = vsub.f32 %v439_v45, %v537_v14  ;;  %v575_v27 = vsub.f32 %v442_v48, %v541_v16  ;;  %v576_v31 = vsub.f32 %v445_v47, %v545_v24  ;;  %v577_v36 = vsub.f32 %v448_v52, %v549_v30 }
 0x2f5   :  { %v578_v41 = vsub.f32 %v451_v55, %v553_v35  ;;  %v561_v44 = vrot.slane %v533_v13, %v560_v37  ;;  %v579_v45 = vsub.f32 %v1296_v58, %v557_v40  ;;  %v581_v28 = vsub.f32 %v1305_v63, %v565_v50 }
 0x2f6   :  { %v582_v32 = vmul.f32 1.442695, %v574_v25  ;;  %v584_v33 = vmul.f32 1.442695, %v575_v27  ;;  %v586_v38 = vmul.f32 1.442695, %v576_v31 }
 0x2f7   :  { %v588_v42 = vmul.f32 1.442695, %v577_v36  ;;  %v590_v47 = vmul.f32 1.442695, %v578_v41  ;;  %v580_v51 = vsub.f32 %v1301_v61, %v561_v44  ;;  %v592_v52 = vmul.f32 1.442695, %v579_v45 }
 0x2f8   :  { %944 = vpow2.f32 %v582_v32  ;;  %v596_v57 = vmul.f32 1.442695, %v581_v28 }
 0x2f9   :  { %946 = vpow2.f32 %v584_v33  ;;  %v594_v54 = vmul.f32 1.442695, %v580_v51 }
 0x2fa   :  { %948 = vpow2.f32 %v586_v38 }
 0x2fb   :  { %950 = vpow2.f32 %v528_v39 }
 0x2fc   :  { %952 = vpow2.f32 %v588_v42 }
 0x2fd   :  { %954 = vpow2.f32 %v590_v47 }
 0x2fe   :  { %956 = vpow2.f32 %v592_v52 }
 0x2ff   :  { %958 = vpow2.f32 %v594_v54 }
 0x300   :  { %960 = vpow2.f32 %v596_v57 }
 0x302   :  { %v945_v48 = vpop.eup %944 }
 0x303   :  { %v947_v49 = vpop.eup %946  ;;  %609 = vperm.xlu0 %927, %v945_v48  }
 0x304   :  { %612 = vperm.xlu1 %926, %v947_v49   ;;  %v949_v26 = vpop.eup %948 }
 0x305   :  { %v1326_v55 = vpop.eup %950 }
 0x306   :  { %v953_v56 = vpop.eup %952 }
 0x307   :  { %796 = vperm.xlu0 %927, %v792_v53   ;;  %v955_v58 = vpop.eup %954 }
 0x308   :  { %615 = vperm.xlu1 %926, %v949_v26   ;;  %v957_v59 = vpop.eup %956 }
 0x309   :  { %v959_v60 = vpop.eup %958 }
 0x30a   :  { %v961_v61 = vpop.eup %960 }
 0x30b   :  { %753 = vperm.xlu0 %927, %v1326_v55  }
 0x30c   :  { %618 = vperm.xlu1 %926, %v953_v56  }
 0x310   :  { %621 = vperm.xlu1 %926, %v955_v58  }
 0x314   :  { %624 = vperm.xlu1 %926, %v957_v59  }
 0x318   :  { %627 = vperm.xlu1 %926, %v959_v60  }
 0x31c   :  { %630 = vperm.xlu1 %926, %v961_v61  }
 0x382   :  { %v610_v62 = vpop.permute.xlu0 %609 }
 0x383   :  { %v613_v63 = vpop.permute.xlu1 %612  ;;  %v686_v0 = vmul.f32 %v610_v62, %v1226_v17 }
 0x384   :  { %v687_v1 = vmul.f32 %v613_v63, %v1243_v22  ;;  %v639_v31 = vrot.slane %v613_v63, %v1286_v46 }
 0x385   :  { %v694_v2 = vsel %vm87_vm1, %v686_v0, 0.0 }
 0x386   :  { %v701_v5 = vsel %vm87_vm1, %v687_v1, 0.0  ;;  %v695_v6 = vrot.slane %v694_v2, 4 }
 0x387   :  { %v616_v3 = vpop.permute.xlu1 %615  ;;  %v702_v10 = vrot.slane %v701_v5, 4 }
 0x388   :  { %v688_v4 = vmul.f32 %v616_v3, %v1222_v15  ;;  %v696_v11 = vadd.f32 %v695_v6, %v694_v2  ;;  %v643_v34 = vrot.slane %v616_v3, %v1286_v46 }
 0x389   :  { %v703_v16 = vadd.f32 %v702_v10, %v701_v5  ;;  %v797_v10 = vpop.permute.xlu0 %796 }
 0x38a   :  { %v708_v7 = vsel %vm87_vm1, %v688_v4, 0.0  ;;  %v697_v24 = vrot.slane %v696_v11, 2 }
 0x38b   :  { %v619_v8 = vpop.permute.xlu1 %618  ;;  %v709_v12 = vrot.slane %v708_v7, 4  ;;  %v704_v33 = vrot.slane %v703_v16, 2 }
 0x38c   :  { %v689_v9 = vmul.f32 %v619_v8, %v1228_v18  ;;  %v635_v18 = vrot.slane %v610_v62, %v1286_v46  ;;  %v698_v36 = vadd.f32 %v697_v24, %v696_v11  ;;  %v647_v38 = vrot.slane %v619_v8, %v1286_v46 }
 0x38d   :  { %v710_v15 = vadd.f32 %v709_v12, %v708_v7  ;;  %v705_v47 = vadd.f32 %v704_v33, %v703_v16 }
 0x38e   :  { %v715_v17 = vsel %vm87_vm1, %v689_v9, 0.0  ;;  %v664_v43 = vsel %vm503_vm3, %v639_v31, %v635_v18  ;;  %v699_v51 = vrot.slane %v698_v36, 1  ;;  %v750_v18 = vld [vmem:[#allocation4] sm:$0xff] }
 0x38f   :  { %v716_v13 = vrot.slane %v715_v17, 4  ;;  %v622_v22 = vpop.permute.xlu1 %621  ;;  %v665_v48 = vsel %vm505_vm4, %v643_v34, %v664_v43  ;;  %v706_v62 = vrot.slane %v705_v47, 1 }
 0x390   :  { %v690_v14 = vmul.f32 %v622_v22, %v1231_v19  ;;  %v711_v19 = vrot.slane %v710_v15, 2  ;;  %v651_v40 = vrot.slane %v622_v22, %v1286_v46  ;;  %v666_v53 = vsel %vm507_vm5, %v647_v38, %v665_v48 }
 0x391   :  { %v717_v27 = vadd.f32 %v716_v13, %v715_v17  ;;  %v700_v8 = vadd.f32 %v699_v51, %v698_v36 }
 0x392   :  { %v722_v25 = vsel %vm87_vm1, %v690_v14, 0.0  ;;  %v712_v52 = vadd.f32 %v711_v19, %v710_v15  ;;  %v667_v54 = vsel %vm509_vm6, %v651_v40, %v666_v53  ;;  %v598_v40 = vld [vmem:[#allocation3] sm:$0xff] }
 0x393   :  { %v723_v29 = vrot.slane %v722_v25, 4  ;;  %v625_v30 = vpop.permute.xlu1 %624  ;;  %v718_v37 = vrot.slane %v717_v27, 2 }
 0x394   :  { %v691_v32 = vmul.f32 %v625_v30, %v1239_v20  ;;  %v655_v20 = vrot.slane %v625_v30, %v1286_v46  ;;  %v713_v2 = vrot.slane %v712_v52, 1 }
 0x395   :  { %v724_v35 = vadd.f32 %v723_v29, %v722_v25  ;;  %v719_v28 = vadd.f32 %v718_v37, %v717_v27 }
 0x396   :  { %v729_v39 = vsel %vm87_vm1, %v691_v32, 0.0  ;;  %v668_v61 = vsel %vm511_vm7, %v655_v20, %v667_v54  ;;  %v714_v13 = vadd.f32 %v713_v2, %v712_v52  ;;  %v754_v32 = vpop.permute.xlu0 %753 }
 0x397   :  { %v730_v41 = vrot.slane %v729_v39, 4  ;;  %v628_v42 = vpop.permute.xlu1 %627  ;;  %v725_v44 = vrot.slane %v724_v35, 2  ;;  %v720_v5 = vrot.slane %v719_v28, 1  ;;  %v756_v19 = vmul.f32 %v754_v32, %v750_v18 }
 0x398   :  { %v692_v45 = vmul.f32 %v628_v42, %v1241_v21  ;;  %v659_v50 = vrot.slane %v628_v42, %v1286_v46 }
 0x399   :  { %v731_v49 = vadd.f32 %v730_v41, %v729_v39  ;;  %v726_v59 = vadd.f32 %v725_v44, %v724_v35  ;;  %v721_v22 = vadd.f32 %v720_v5, %v719_v28  ;;  %v599_v41 = vmul.f32 %v1326_v55, %v598_v40 }
 0x39a   :  { %v736_v26 = vsel %vm87_vm1, %v692_v45, 0.0  ;;  %v669_v1 = vsel %vm513_vm8, %v659_v50, %v668_v61 }
 0x39b   :  { %v732_v56 = vrot.slane %v731_v49, 2  ;;  %v737_v57 = vrot.slane %v736_v26, 4  ;;  %v631_v58 = vpop.permute.xlu1 %630  ;;  %v727_v9 = vrot.slane %v726_v59, 1 }
 0x39c   :  { %v663_v21 = vrot.slane %v631_v58, %v1286_v46  ;;  %v693_v60 = vmul.f32 %v631_v58, %v1249_v23  ;;  %v707_v23 = vadd.f32 %v706_v62, %v705_v47 }
 0x39d   :  { %v733_v63 = vadd.f32 %v732_v56, %v731_v49  ;;  %v738_v0 = vadd.f32 %v737_v57, %v736_v26  ;;  %v728_v24 = vadd.f32 %v727_v9, %v726_v59  ;;  %v793_v49 = vld [vmem:[#allocation5] sm:$0xff] }
 0x39e   :  { %v743_v3 = vsel %vm87_vm1, %v693_v60, 0.0  ;;  %v670_v4 = vsel %vm515_vm9, %v663_v21, %v669_v1  ;;  %v765_v15 = vsel %vm503_vm3, %v707_v23, %v700_v8  ;;  %v799_v50 = vsub.f32 %v793_v49, %v797_v10 }
 0x39f   :  { %v739_v6 = vrot.slane %v738_v0, 2  ;;  %v744_v7 = vrot.slane %v743_v3, 4  ;;  %v672_v46 = vsel %vm520_vm10, %v670_v4, 0.0  ;;  %v734_v11 = vrot.slane %v733_v63, 1 }
 0x3a0   :  { %673 = vadd.xlane.f32.xlu1 %v672_v46  ;;  %v766_v29 = vsel %vm505_vm4, %v714_v13, %v765_v15  ;;  %v800_v51 = vmul.f32 1.442695, %v799_v50 }
 0x3a1   :  { %v740_v12 = vadd.f32 %v739_v6, %v738_v0  ;;  %v745_v17 = vadd.f32 %v744_v7, %v743_v3  ;;  %v735_v25 = vadd.f32 %v734_v11, %v733_v63  ;;  %v767_v31 = vsel %vm507_vm5, %v721_v22, %v766_v29 }
 0x3a2   :  { %v768_v34 = vsel %vm509_vm6, %v728_v24, %v767_v31 }
 0x3a3   :  { %v741_v14 = vrot.slane %v740_v12, 1  ;;  %v746_v16 = vrot.slane %v745_v17, 2  ;;  %v769_v35 = vsel %vm511_vm7, %v735_v25, %v768_v34 }
 0x3a5   :  { %v747_v27 = vadd.f32 %v746_v16, %v745_v17  ;;  %v742_v30 = vadd.f32 %v741_v14, %v740_v12 }
 0x3a7   :  { %v748_v33 = vrot.slane %v747_v27, 1  ;;  %v770_v38 = vsel %vm513_vm8, %v742_v30, %v769_v35 }
 0x3a9   :  { %v749_v36 = vadd.f32 %v748_v33, %v747_v27 }
 0x3ab   :  { %v771_v39 = vsel %vm515_vm9, %v749_v36, %v770_v38 }
 0x3ac   :  { %v773_v37 = vadd.f32 %v771_v39, %v756_v19 }
 0x3ae   :  { %774 = vst.msk [vmem:[#allocation4] sm:$0xff] %vm87_vm1, %v773_v37 }
 0x3b5   :  { %v784_v52 = vld [vmem:[#allocation4] sm:$0xff] }
 0x42d   :  { %v674_v42 = vpop.xlane.xlu1 %673 }
 0x42e   :  { %v675_v43 = vadd.f32 %v674_v42, %v599_v41 }
 0x430   :  { %677 = vst.msk [vmem:[#allocation3] sm:$0xff] %vm84_vm0, %v675_v43 }
 0x437   :  { %v779_v44 = vld [vmem:[#allocation3] sm:$0xff] }
 0x438   :  { %962 = vrcp.f32 %v779_v44 }
 0x439   :  { %964 = vpow2.f32 %v800_v51 }
 0x442   :  { %v963_v20 = vpop.eup %962 }
 0x443   :  { %v781_v45 = vmul.f32 %v963_v20, %v779_v44  ;;  %v965_v55 = vpop.eup %964 }
 0x445   :  { %v782_v47 = vsub.f32 2.0, %v781_v45 }
 0x447   :  { %v783_v48 = vmul.f32 %v963_v20, %v782_v47 }
 0x449   :  { %787 = vperm.xlu0 %927, %v783_v48  }
 0x4c8   :  { %v788_v53 = vpop.permute.xlu0 %787 }
 0x4c9   :  { %v790_v26 = vmul.f32 %v788_v53, %v784_v52  ;;  %v802_v28 = vmul.f32 %v965_v55, %v788_v53 }
 0x4cb   :  { %791 = vst.msk [vmem:[#allocation14] sm:$0xff] %vm87_vm1, %v790_v26 }
 0x4cc   :  { %803 = vst.msk [vmem:[#allocation15] sm:$0xff] %vm520_vm10, %v802_v28 }
 0x4cd   :  { %1065 = shalt.err (!%p1062_p8)
}
 0x4ce   :  { %s1066_s9 = scalar_lea.hbm %s1403_s6, 128 }
 0x4cf   :  { %p1067_p9 = scmp.ne.s32.totalorder %s1403_s6, %s1066_s9  ;;  %p1070_p10 = scmp.lt.u32.totalorder %s1066_s9, %s1403_s6 }
 0x4d1   :  { %p1072_p11 = pnand %p1070_p10, %p1067_p9 }
 0x4d3   :  { %1075 = shalt.err (!%p1072_p11)
}
 0x4d4   :  { %813 = dma.vmem_to_hbm [thread:$0]  %s811_s25, 128, %s1403_s6, [#allocation8]  }
 0x4d5   :  { %s1076_s17 = scalar_lea.vmem %s821_s28, 128  ;;  %p1081_p13 = scmp.lt.s32.totalorder %s821_s28, %s821_s28 }
 0x4d6   :  { %p1077_p12 = scmp.ne.s32.totalorder %s821_s28, %s1076_s17  ;;  %p1082_p0 = scmp.lt.s32.totalorder %s1076_s17, %s1076_s17 }
 0x4d8   :  { %p1083_p1 = por %p1082_p0, %p1081_p13 }
 0x4da   :  { %p1084_p2 = pnand %p1083_p1, %p1077_p12 }
 0x4dc   :  { %1087 = shalt.err (!%p1084_p2)
}
 0x4dd   :  { %s1088_s21 = scalar_lea.hbm %s1404_s7, 128 }
 0x4de   :  { %p1089_p3 = scmp.ne.s32.totalorder %s1404_s7, %s1088_s21  ;;  %p1092_p4 = scmp.lt.u32.totalorder %s1088_s21, %s1404_s7 }
 0x4e0   :  { %p1094_p5 = pnand %p1092_p4, %p1089_p3 }
 0x4e2   :  { %1097 = shalt.err (!%p1094_p5)
}
 0x4e3   :  { %823 = dma.vmem_to_hbm [thread:$0]  %s821_s28, 128, %s1404_s7, [#allocation16]  }
 0x4e4   :  { %1104 = dma.done.wait [#allocation8], 128  }
 0x4e5   :  { %1105 = vsyncadd [#allocation8], 4294967168 }
 0x4e6   :  { %1106 = dma.done.wait [#allocation16], 128  }
 0x4e7   :  { %1107 = vsyncadd [#allocation16], 4294967168 }
 0x4e8   :  { %830 = vsyncpa [#allocation7], 1 }
 0x4e9   :  { %831 = vsyncpa [#allocation10], 1 }
 0x4ea   :  { %832 = vsyncpa [#allocation13], 1 }
 0x4eb   :  { %833 = vsyncpa [#allocation8], 1 }
 0x4ec   :  { %834 = vsyncpa [#allocation16], 1 }

// kernel: tpu_custom_call.1
= control target key start
LH: loop header
LB: loop body
LE: loop exit
PB: predicated region body
PF: predicated region fallthrough
CT: control target
= control target key end

     0   :  { %13 = vsyncpa [#allocation7], 0  ;;  %s1397_s0 = inlined_call_operand.hbm [shape: f32[8,32], index: 0, kind: input, shape index: {}]   ;;  %s1398_s1 = inlined_call_operand.hbm [shape: f32[8,8,32], index: 1, kind: input, shape index: {}]   ;;  %s1399_s2 = inlined_call_operand.hbm [shape: f32[32,32], index: 2, kind: input, shape index: {}]   ;;  %s1400_s3 = inlined_call_operand.hbm [shape: f32[32,32], index: 3, kind: input, shape index: {}]   ;;  %s1401_s4 = inlined_call_operand.vmem [shape: f32[1,32], index: 4, kind: input, shape index: {}]   ;;  %s1402_s5 = inlined_call_operand.vmem [shape: f32[1,32], index: 5, kind: input, shape index: {}]   ;;  %s1403_s6 = inlined_call_operand.hbm [shape: f32[8,32], index: 6, kind: output, shape index: {0}]   ;;  %s1404_s7 = inlined_call_operand.hbm [shape: f32[8,8], index: 7, kind: output, shape index: {1}]  }
   0x1   :  { %14 = vsyncpa [#allocation10], 0 }
   0x2   :  { %15 = vsyncpa [#allocation13], 0 }
   0x3   :  { %16 = vsyncpa [#allocation8], 0 }
   0x4   :  { %17 = vsyncpa [#allocation16], 0  ;;  %s1108_s24 = smov [#allocation9]   ;;  %s966_s28 = scalar_lea.hbm %s1398_s1, 1024 }
   0x5   :  { %s33_s25 = sshll.u32 %s1108_s24, 4  ;;  %p967_p0 = scmp.ne.s32.totalorder %s1398_s1, %s966_s28  ;;  %s34_s25 = int_to_ptr.vmem [resolvable:$true] %s33_s25 }
   0x6   :  { %p970_p1 = scmp.lt.u32.totalorder %s966_s28, %s1398_s1 }
   0x8   :  { %p972_p2 = pnand %p970_p1, %p967_p0 }
   0xa   :  { %975 = shalt.err (!%p972_p2)
}
   0xb   :  { %s976_s10 = scalar_lea.vmem %s34_s25, 1024  ;;  %p981_p4 = scmp.lt.s32.totalorder %s34_s25, %s34_s25 }
   0xc   :  { %p977_p3 = scmp.ne.s32.totalorder %s34_s25, %s976_s10  ;;  %p982_p5 = scmp.lt.s32.totalorder %s976_s10, %s976_s10 }
   0xe   :  { %p983_p6 = por %p982_p5, %p981_p4 }
  0x10   :  { %p984_p7 = pnand %p983_p6, %p977_p3 }
  0x12   :  { %987 = shalt.err (!%p984_p7)
}
  0x13   :  { %s1109_s11 = smov 128   ;;  %s1110_s12 = smov 8  }
  0x14   :  { %39 = dma.hbm_to_vmem [thread:$0]  %s1398_s1, 1024, %s34_s25, [#allocation10], %s1109_s11, %s1109_s11, %s1110_s12  }
  0x15   :  { %s1111_s15 = smov [#allocation6]   ;;  %s1112_s17 = smov [#allocation11]  }
  0x16   :  { %s24_s16 = sshll.u32 %s1111_s15, 4  ;;  %s45_s18 = sshll.u32 %s1112_s17, 4  ;;  %s25_s16 = int_to_ptr.vmem [resolvable:$true] %s24_s16  ;;  %s46_s18 = int_to_ptr.vmem [resolvable:$true] %s45_s18 }
  0x17   :  { %s988_s21 = scalar_lea.hbm %s1397_s0, 128 }
  0x18   :  { %p989_p8 = scmp.ne.s32.totalorder %s1397_s0, %s988_s21  ;;  %p992_p9 = scmp.lt.u32.totalorder %s988_s21, %s1397_s0 }
  0x1a   :  { %p994_p10 = pnand %p992_p9, %p989_p8 }
  0x1c   :  { %997 = shalt.err (!%p994_p10)
}
  0x1d   :  { %s998_s1 = scalar_lea.vmem %s25_s16, 128  ;;  %p1003_p12 = scmp.lt.s32.totalorder %s25_s16, %s25_s16 }
  0x1e   :  { %p999_p11 = scmp.ne.s32.totalorder %s25_s16, %s998_s1  ;;  %p1004_p13 = scmp.lt.s32.totalorder %s998_s1, %s998_s1 }
  0x20   :  { %p1005_p0 = por %p1004_p13, %p1003_p12 }
  0x22   :  { %p1006_p1 = pnand %p1005_p0, %p999_p11 }
  0x24   :  { %1009 = shalt.err (!%p1006_p1)
}
  0x25   :  { %27 = dma.hbm_to_vmem [thread:$0]  %s1397_s0, 128, %s25_s16, [#allocation7]  }
  0x26   :  { %s1010_s30 = scalar_lea.hbm %s1399_s2, 512 }
  0x27   :  { %p1011_p2 = scmp.ne.s32.totalorder %s1399_s2, %s1010_s30  ;;  %p1014_p3 = scmp.lt.u32.totalorder %s1010_s30, %s1399_s2 }
  0x29   :  { %p1016_p4 = pnand %p1014_p3, %p1011_p2 }
  0x2b   :  { %1019 = shalt.err (!%p1016_p4)
}
  0x2c   :  { %s1020_s14 = scalar_lea.vmem %s46_s18, 512  ;;  %p1025_p6 = scmp.lt.s32.totalorder %s46_s18, %s46_s18 }
  0x2d   :  { %p1021_p5 = scmp.ne.s32.totalorder %s46_s18, %s1020_s14  ;;  %p1026_p7 = scmp.lt.s32.totalorder %s1020_s14, %s1020_s14 }
  0x2f   :  { %p1027_p8 = por %p1026_p7, %p1025_p6 }
  0x31   :  { %p1028_p9 = pnand %p1027_p8, %p1021_p5 }
  0x33   :  { %1031 = shalt.err (!%p1028_p9)
}
  0x34   :  { %51 = dma.hbm_to_vmem [thread:$0]  %s1399_s2, 512, %s46_s18, [#allocation10], %s1109_s11, %s1109_s11, %s1110_s12  }
  0x35   :  { %s1113_s16 = smov [#allocation12]   ;;  %s1032_s21 = scalar_lea.hbm %s1400_s3, 512 }
  0x36   :  { %s57_s17 = sshll.u32 %s1113_s16, 4  ;;  %p1033_p10 = scmp.ne.s32.totalorder %s1400_s3, %s1032_s21  ;;  %s58_s17 = int_to_ptr.vmem [resolvable:$true] %s57_s17 }
  0x37   :  { %p1036_p11 = scmp.lt.u32.totalorder %s1032_s21, %s1400_s3 }
  0x39   :  { %p1038_p12 = pnand %p1036_p11, %p1033_p10 }
  0x3b   :  { %1041 = shalt.err (!%p1038_p12)
}
  0x3c   :  { %s1042_s1 = scalar_lea.vmem %s58_s17, 512  ;;  %p1047_p0 = scmp.lt.s32.totalorder %s58_s17, %s58_s17 }
  0x3d   :  { %p1043_p13 = scmp.ne.s32.totalorder %s58_s17, %s1042_s1  ;;  %p1048_p1 = scmp.lt.s32.totalorder %s1042_s1, %s1042_s1 }
  0x3f   :  { %p1049_p2 = por %p1048_p1, %p1047_p0 }
  0x41   :  { %p1050_p3 = pnand %p1049_p2, %p1043_p13 }
  0x43   :  { %1053 = shalt.err (!%p1050_p3)
}
  0x44   :  { %63 = dma.hbm_to_vmem [thread:$0]  %s1400_s3, 512, %s58_s17, [#allocation13], %s1109_s11, %s1109_s11, %s1110_s12  }
  0x45   :  { %1098 = dma.done.wait [#allocation7], 128  }
  0x46   :  { %1099 = vsyncadd [#allocation7], 4294967168 }
  0x47   :  { %1100 = dma.done.wait [#allocation10], 1536  }
  0x48   :  { %1101 = vsyncadd [#allocation10], 4294965760 }
  0x49   :  { %1102 = dma.done.wait [#allocation13], 512  }
  0x4a   :  { %1103 = vsyncadd [#allocation13], 4294966784  ;;  %vm84_vm0 = vcmask 7168   ;;  %v1114_v0 = vmov 0.0|0.0   ;;  %v1115_v1 = vmov -1e+30   ;;  %v321_v26 = vlaneseq }
  0x4b   :  { %894 = vmatprep.subr.bf16.mxu0 %v1114_v0  ;;  %85 = vst.msk [vmem:[#allocation2] sm:$0xff] %vm84_vm0, %v1115_v1  ;;  %vm87_vm1 = vcmask 261120   ;;  %v1116_v2 = vmov 0.0   ;;  %vm1117_vm2 = vmmov 0   ;;  %v98_v3 = vld [vmem:[#allocation11] sm:$0xff]  ;;  %v99_v4 = vld [vmem:[#allocation11 + $0x8] sm:$0xff] }
  0x4c   :  { %86 = vst.msk [vmem:[#allocation3] sm:$0xff] %vm84_vm0, %v1116_v2  ;;  %871 = vmatprep.mubr.msk.f32.mxu0 %vm1117_vm2, %v1116_v2  ;;  %v183_v5 = vld [vmem:[#allocation12] sm:$0xff]  ;;  %v895_v6 = vpack.c.bf16 %v99_v4, %v98_v3  ;;  %v184_v7 = vld [vmem:[#allocation12 + $0x8] sm:$0xff]  ;;  %v100_v8 = vld [vmem:[#allocation11 + $0x10] sm:$0xff]  ;;  %v1118_v24 = vmov 1966171168  }
  0x4d   :  { %88 = vst.msk [vmem:[#allocation4] sm:$0xff] %vm87_vm1, %v1116_v2  ;;  %v101_v9 = vld [vmem:[#allocation11 + $0x18] sm:$0xff]  ;;  %v900_v10 = vpack.c.bf16 %v184_v7, %v183_v5  ;;  %v185_v11 = vld [vmem:[#allocation12 + $0x10] sm:$0xff]  ;;  %v1226_v17 = vld [vmem:[#allocation9] sm:$0xff]  ;;  %v319_v25 = vunpack.c.l.s4 %v1118_v24  ;;  %v1256_v28 = vshrl.u32 %v321_v26, 7  ;;  %vm503_vm3 = vcmask 1041409  }
  0x4e   :  { %v186_v12 = vld [vmem:[#allocation12 + $0x18] sm:$0xff]  ;;  %896 = vmatpush3.bf16.msra.mxu0 %v895_v6  ;;  %v898_v13 = vpack.c.bf16 %v101_v9, %v100_v8  ;;  %v1222_v15 = vld [vmem:[#allocation9 + $0x10] sm:$0xff]  ;;  %v1231_v19 = vld [vmem:[#allocation9 + $0x20] sm:$0xff]  ;;  %vm505_vm4 = vcmask 1042434   ;;  %vm507_vm5 = vcmask 1043459   ;;  %vm509_vm6 = vcmask 1044484  }
  0x4f   :  { %v904_v14 = vpack.c.bf16 %v186_v12, %v185_v11  ;;  %908 = vmatprep.subr.bf16.mxu1 %v900_v10  ;;  %897 = vmatprep.subr.bf16.mxu0 %v1114_v0  ;;  %v89_v16 = vld [vmem:[#allocation6] sm:$0xff]  ;;  %v1239_v20 = vld [vmem:[#allocation9 + $0x28] sm:$0xff]  ;;  %v1241_v21 = vld [vmem:[#allocation9 + $0x30] sm:$0xff]  ;;  %v320_v27 = vunpack.c.0.s8 %v319_v25  ;;  %v1263_v37 = vsub.s32 0, %v1256_v28  ;;  %vm511_vm7 = vcmask 1045509   ;;  %s1121_s27 = smov [#allocation15]  }
  0x50   :  { %910 = vmatpush3.bf16.msra.mxu1 %v900_v10  ;;  %885 = vmatprep.mubr.msk.f32.mxu1 %vm87_vm1, %v1222_v15  ;;  %v1228_v18 = vld [vmem:[#allocation9 + $0x18] sm:$0xff]  ;;  %v1243_v22 = vld [vmem:[#allocation9 + $0x8] sm:$0xff]  ;;  %vm513_vm8 = vcmask 1046534   ;;  %vm515_vm9 = vcmask 1047559   ;;  %vm520_vm10 = vcmask 64512   ;;  %s820_s28 = sshll.u32 %s1121_s27, 4  ;;  %s821_s28 = int_to_ptr.vmem [resolvable:$true] %s820_s28 }
  0x51   :  { %909 = vmatprep.subr.bf16.mxu1 %v904_v14  ;;  %v1249_v23 = vld [vmem:[#allocation9 + $0x38] sm:$0xff]  ;;  %v323_v30 = vsub.s32 %v320_v27, %v1256_v28 }
  0x52   :  { %899 = vmatpush3.bf16.msra.mxu0 %v898_v13  ;;  %v835_v29 = vld [vmem:[%s1401_s4] ss:$0 sm:$0xff] }
  0x53   :  { %901 = vmatprep.subr.bf16.mxu0 %v900_v10  ;;  %v845_v8 = vld [vmem:[%s1402_s5] ss:$0 sm:$0xff]  ;;  %s1120_s5 = smov [#allocation14]  }
  0x54   :  { %911 = vmatpush3.bf16.msra.mxu1 %v904_v14  ;;  %s810_s25 = sshll.u32 %s1120_s5, 4  ;;  %s811_s25 = int_to_ptr.vmem [resolvable:$true] %s810_s25 }
  0x55   :  { %872 = vmatmul.mubr.msk.f32.vlgmr.msra.gmra.mrb[0].mxu0 %vm87_vm1, %v89_v16  ;;  %s1054_s29 = scalar_lea.vmem %s811_s25, 128  ;;  %p1059_p5 = scmp.lt.s32.totalorder %s811_s25, %s811_s25 }
  0x56   :  { %903 = vmatpush3.bf16.msra.mxu0 %v900_v10  ;;  %882 = vmatprep.mubr.msk.f32.mxu0 %vm87_vm1, %v1226_v17  ;;  %p1055_p4 = scmp.ne.s32.totalorder %s811_s25, %s1054_s29  ;;  %p1060_p6 = scmp.lt.s32.totalorder %s1054_s29, %s1054_s29 }
  0x57   :  { %886 = vmatmul.mubr.msk.f32.vlgmr.msra.gmra.mrb[0].mxu1 %vm87_vm1, %v1228_v18  ;;  %905 = vmatprep.subr.bf16.mxu0 %v904_v14 }
  0x58   :  { %888 = vmatprep.mubr.msk.f32.mxu1 %vm87_vm1, %v1231_v19  ;;  %p1061_p7 = por %p1060_p6, %p1059_p5 }
  0x5a   :  { %907 = vmatpush3.bf16.msra.mxu0 %v904_v14  ;;  %p1062_p8 = pnand %p1061_p7, %p1055_p4 }
  0x5b   :  { %889 = vmatmul.mubr.msk.f32.gmra.mrb[2].mxu1 %vm87_vm1, %v1239_v20 }
  0x5c   :  { %891 = vmatprep.mubr.msk.f32.mxu1 %vm87_vm1, %v1241_v21 }
  0x5d   :  { %883 = vmatmul.mubr.msk.f32.vlgmr.msra.gmra.mrb[2].mxu0 %vm87_vm1, %v1243_v22 }
  0x5f   :  { %892 = vmatmul.mubr.msk.f32.gmra.mrb[4].mxu1 %vm87_vm1, %v1249_v23 }
 0x128   :  { %v179_v31 = vpop.f32.mrb[0].mxu0 }
 0x129   :  { %v180_v32 = vadd.f32 %v835_v29, %v179_v31  ;;  %v873_v33 = vpop.f32.mrb[1].mxu0 }
 0x12a   :  { %v887_v34 = vpop.f32.mrb[0].mxu1 }
 0x12b   :  { %v317_v35 = vcombine.high %v180_v32, %v180_v32  ;;  %v324_v36 = vrot.slane %v180_v32, %v323_v30  ;;  %v287_v38 = vpop.f32.mrb[1].mxu1 }
 0x12d   :  { %v331_v39 = vrot.slane %v317_v35, %v323_v30  ;;  %v332_v40 = vcombine.high %v324_v36, %v324_v36  ;;  %v340_v41 = vrot.slane %v324_v36, %v323_v30 }
 0x12e   :  { %v890_v42 = vpop.f32.mrb[2].mxu1 }
 0x12f   :  { %v354_v43 = vrot.slane %v332_v40, %v323_v30  ;;  %v362_v44 = vcombine.high %v340_v41, %v340_v41  ;;  %v369_v45 = vrot.slane %v340_v41, %v1263_v37  ;;  %v333_v46 = vcombine.high %v331_v39, %v331_v39  ;;  %v297_v47 = vpop.f32.mrb[3].mxu1 }
 0x130   :  { %v884_v48 = vpop.f32.mrb[2].mxu0  ;;  %v347_v49 = vrot.slane %v331_v39, %v323_v30 }
 0x131   :  { %v364_v50 = vcombine.high %v354_v43, %v354_v43  ;;  %v373_v51 = vrot.slane %v354_v43, %v1263_v37  ;;  %v377_v52 = vrot.slane %v362_v44, %v1263_v37  ;;  %v277_v53 = vpop.f32.mrb[3].mxu0  ;;  %v361_v54 = vrot.slane %v333_v46, %v323_v30 }
 0x132   :  { %v406_v55 = vadd.f32 %v369_v45, %v277_v53  ;;  %v385_v56 = vrot.slane %v347_v49, %v1263_v37  ;;  %v893_v57 = vpop.f32.mrb[4].mxu1  ;;  %v363_v58 = vcombine.high %v347_v49, %v347_v49  ;;  %v470_v44 = vand.u32 127, %v321_v26 }
 0x133   :  { %v381_v59 = vrot.slane %v364_v50, %v1263_v37  ;;  %v407_v60 = vadd.f32 %v884_v48, %v373_v51  ;;  %v408_v61 = vadd.f32 %v377_v52, %v287_v38  ;;  %v389_v62 = vrot.slane %v361_v54, %v1263_v37  ;;  %v307_v63 = vpop.f32.mrb[5].mxu1 }
 0x134   :  { %928 = vtanh.f32 %v406_v55  ;;  %v410_v0 = vadd.f32 %v385_v56, %v297_v47  ;;  %v365_v1 = vcombine.high %v361_v54, %v361_v54  ;;  %v393_v2 = vrot.slane %v363_v58, %v1263_v37 }
 0x135   :  { %v409_v3 = vadd.f32 %v887_v34, %v381_v59  ;;  %930 = vtanh.f32 %v407_v60  ;;  %v411_v4 = vadd.f32 %v890_v42, %v389_v62  ;;  %v1286_v46 = vsub.s32 %v470_v44, %v1256_v28 }
 0x136   :  { %932 = vtanh.f32 %v408_v61  ;;  %v397_v5 = vrot.slane %v365_v1, %v1263_v37  ;;  %v412_v6 = vadd.f32 %v393_v2, %v307_v63 }
 0x137   :  { %934 = vtanh.f32 %v409_v3 }
 0x138   :  { %v413_v7 = vadd.f32 %v893_v57, %v397_v5  ;;  %936 = vtanh.f32 %v410_v0  ;;  %v1119_v5 = vmov 0  }
 0x139   :  { %938 = vtanh.f32 %v411_v4  ;;  %926 = vset.pattern.permute.xlu1 %v1119_v5  ;;  %927 = vset.pattern.permute.xlu0 %v1119_v5 }
 0x13a   :  { %940 = vtanh.f32 %v412_v6  ;;  %v522_v6 = vld [vmem:[#allocation2] sm:$0xff] }
 0x13b   :  { %942 = vtanh.f32 %v413_v7 }
 0x13e   :  { %v929_v9 = vpop.eup %928 }
 0x13f   :  { %v931_v10 = vpop.eup %930  ;;  %v429_v11 = vmul.f32 %v929_v9, %v845_v8 }
 0x140   :  { %v933_v12 = vpop.eup %932  ;;  %v430_v24 = vmul.f32 %v931_v10, %v845_v8  ;;  %v540_v10 = vsub.s32 1, %v1256_v28 }
 0x141   :  { %v935_v13 = vpop.eup %934  ;;  %v437_v14 = vsel %vm87_vm1, %v429_v11, 0.0  ;;  %v431_v16 = vmul.f32 %v933_v12, %v845_v8  ;;  %v544_v11 = vsub.s32 2, %v1256_v28  ;;  %v548_v12 = vsub.s32 3, %v1256_v28 }
 0x142   :  { %438 = vadd.xlane.f32.xlu0 %v437_v14  ;;  %v937_v25 = vpop.eup %936  ;;  %v432_v29 = vmul.f32 %v935_v13, %v845_v8  ;;  %v440_v31 = vsel %vm87_vm1, %v430_v24, 0.0 }
 0x143   :  { %v443_v27 = vsel %vm87_vm1, %v431_v16, 0.0  ;;  %v939_v30 = vpop.eup %938  ;;  %v433_v32 = vmul.f32 %v937_v25, %v845_v8 }
 0x144   :  { %444 = vadd.xlane.f32.xlu1 %v443_v27  ;;  %v941_v33 = vpop.eup %940  ;;  %v446_v34 = vsel %vm87_vm1, %v432_v29, 0.0  ;;  %v434_v35 = vmul.f32 %v939_v30, %v845_v8  ;;  %v552_v29 = vsub.s32 4, %v1256_v28 }
 0x145   :  { %v943_v36 = vpop.eup %942  ;;  %v449_v38 = vsel %vm87_vm1, %v433_v32, 0.0  ;;  %v435_v39 = vmul.f32 %v941_v33, %v845_v8 }
 0x146   :  { %441 = vadd.xlane.f32.xlu0 %v440_v31  ;;  %v452_v40 = vsel %vm87_vm1, %v434_v35, 0.0  ;;  %v436_v41 = vmul.f32 %v943_v36, %v845_v8 }
 0x147   :  { %v455_v42 = vsel %vm87_vm1, %v435_v39, 0.0 }
 0x148   :  { %447 = vadd.xlane.f32.xlu1 %v446_v34  ;;  %v458_v43 = vsel %vm87_vm1, %v436_v41, 0.0  ;;  %v556_v34 = vsub.s32 5, %v1256_v28 }
 0x14a   :  { %450 = vadd.xlane.f32.xlu0 %v449_v38 }
 0x14c   :  { %453 = vadd.xlane.f32.xlu1 %v452_v40 }
 0x14e   :  { %456 = vadd.xlane.f32.xlu0 %v455_v42 }
 0x150   :  { %459 = vadd.xlane.f32.xlu1 %v458_v43  ;;  %v564_v43 = vsub.s32 7, %v1256_v28 }
 0x1cf   :  { %v439_v45 = vpop.xlane.xlu0 %438 }
 0x1d0   :  { %v474_v49 = vrot.slane %v439_v45, %v1286_v46 }
 0x1d1   :  { %v445_v47 = vpop.xlane.xlu1 %444 }
 0x1d2   :  { %v482_v51 = vrot.slane %v445_v47, %v1286_v46 }
 0x1d3   :  { %v442_v48 = vpop.xlane.xlu0 %441 }
 0x1d4   :  { %v478_v50 = vrot.slane %v442_v48, %v1286_v46 }
 0x1d5   :  { %v448_v52 = vpop.xlane.xlu1 %447 }
 0x1d6   :  { %v504_v53 = vsel %vm503_vm3, %v478_v50, %v474_v49  ;;  %v486_v26 = vrot.slane %v448_v52, %v1286_v46 }
 0x1d7   :  { %v506_v54 = vsel %vm505_vm4, %v482_v51, %v504_v53  ;;  %v451_v55 = vpop.xlane.xlu0 %450 }
 0x1d8   :  { %v508_v56 = vsel %vm507_vm5, %v486_v26, %v506_v54  ;;  %v490_v57 = vrot.slane %v451_v55, %v1286_v46 }
 0x1d9   :  { %v1296_v58 = vpop.xlane.xlu1 %453 }
 0x1da   :  { %v510_v59 = vsel %vm509_vm6, %v490_v57, %v508_v56  ;;  %v494_v60 = vrot.slane %v1296_v58, %v1286_v46 }
 0x1db   :  { %v1301_v61 = vpop.xlane.xlu0 %456 }
 0x1dc   :  { %v498_v62 = vrot.slane %v1301_v61, %v1286_v46  ;;  %v512_v0 = vsel %vm511_vm7, %v494_v60, %v510_v59 }
 0x1dd   :  { %v1305_v63 = vpop.xlane.xlu1 %459 }
 0x1de   :  { %v502_v1 = vrot.slane %v1305_v63, %v1286_v46  ;;  %v514_v2 = vsel %vm513_vm8, %v498_v62, %v512_v0 }
 0x1e0   :  { %v516_v3 = vsel %vm515_vm9, %v502_v1, %v514_v2 }
 0x1e1   :  { %v523_v4 = vsel %vm520_vm10, %v516_v3, -inf  ;;  %521 = vst.msk [vmem:[#allocation5] sm:$0xff] %vm520_vm10, %v516_v3 }
 0x1e2   :  { %524 = vmax.xlane.f32.xlu0 %v523_v4 }
 0x26f   :  { %v525_v7 = vpop.xlane.xlu0 %524 }
 0x270   :  { %v526_v8 = vmax.f32 %v522_v6, %v525_v7 }
 0x272   :  { %v527_v9 = vsub.f32 %v522_v6, %v526_v8  ;;  %775 = vst.msk [vmem:[#allocation2] sm:$0xff] %vm84_vm0, %v526_v8  ;;  %532 = vperm.xlu1 %926, %v526_v8  }
 0x274   :  { %v528_v39 = vmul.f32 1.442695, %v527_v9 }
 0x279   :  { %v792_v53 = vld [vmem:[#allocation2] sm:$0xff] }
 0x2f1   :  { %v533_v13 = vpop.permute.xlu1 %532 }
 0x2f2   :  { %v537_v14 = vrot.slane %v533_v13, %v1263_v37  ;;  %v541_v16 = vrot.slane %v533_v13, %v540_v10  ;;  %v545_v24 = vrot.slane %v533_v13, %v544_v11  ;;  %v549_v30 = vrot.slane %v533_v13, %v548_v12 }
 0x2f3   :  { %v553_v35 = vrot.slane %v533_v13, %v552_v29  ;;  %v560_v37 = vsub.s32 6, %v1256_v28  ;;  %v557_v40 = vrot.slane %v533_v13, %v556_v34  ;;  %v565_v50 = vrot.slane %v533_v13, %v564_v43 }
 0x2f4   :  { %v574_v25 = vsub.f32 %v439_v45, %v537_v14  ;;  %v575_v27 = vsub.f32 %v442_v48, %v541_v16  ;;  %v576_v31 = vsub.f32 %v445_v47, %v545_v24  ;;  %v577_v36 = vsub.f32 %v448_v52, %v549_v30 }
 0x2f5   :  { %v578_v41 = vsub.f32 %v451_v55, %v553_v35  ;;  %v561_v44 = vrot.slane %v533_v13, %v560_v37  ;;  %v579_v45 = vsub.f32 %v1296_v58, %v557_v40  ;;  %v581_v28 = vsub.f32 %v1305_v63, %v565_v50 }
 0x2f6   :  { %v582_v32 = vmul.f32 1.442695, %v574_v25  ;;  %v584_v33 = vmul.f32 1.442695, %v575_v27  ;;  %v586_v38 = vmul.f32 1.442695, %v576_v31 }
 0x2f7   :  { %v588_v42 = vmul.f32 1.442695, %v577_v36  ;;  %v590_v47 = vmul.f32 1.442695, %v578_v41  ;;  %v580_v51 = vsub.f32 %v1301_v61, %v561_v44  ;;  %v592_v52 = vmul.f32 1.442695, %v579_v45 }
 0x2f8   :  { %944 = vpow2.f32 %v582_v32  ;;  %v596_v57 = vmul.f32 1.442695, %v581_v28 }
 0x2f9   :  { %946 = vpow2.f32 %v584_v33  ;;  %v594_v54 = vmul.f32 1.442695, %v580_v51 }
 0x2fa   :  { %948 = vpow2.f32 %v586_v38 }
 0x2fb   :  { %950 = vpow2.f32 %v528_v39 }
 0x2fc   :  { %952 = vpow2.f32 %v588_v42 }
 0x2fd   :  { %954 = vpow2.f32 %v590_v47 }
 0x2fe   :  { %956 = vpow2.f32 %v592_v52 }
 0x2ff   :  { %958 = vpow2.f32 %v594_v54 }
 0x300   :  { %960 = vpow2.f32 %v596_v57 }
 0x302   :  { %v945_v48 = vpop.eup %944 }
 0x303   :  { %v947_v49 = vpop.eup %946  ;;  %609 = vperm.xlu0 %927, %v945_v48  }
 0x304   :  { %612 = vperm.xlu1 %926, %v947_v49   ;;  %v949_v26 = vpop.eup %948 }
 0x305   :  { %v1326_v55 = vpop.eup %950 }
 0x306   :  { %v953_v56 = vpop.eup %952 }
 0x307   :  { %796 = vperm.xlu0 %927, %v792_v53   ;;  %v955_v58 = vpop.eup %954 }
 0x308   :  { %615 = vperm.xlu1 %926, %v949_v26   ;;  %v957_v59 = vpop.eup %956 }
 0x309   :  { %v959_v60 = vpop.eup %958 }
 0x30a   :  { %v961_v61 = vpop.eup %960 }
 0x30b   :  { %753 = vperm.xlu0 %927, %v1326_v55  }
 0x30c   :  { %618 = vperm.xlu1 %926, %v953_v56  }
 0x310   :  { %621 = vperm.xlu1 %926, %v955_v58  }
 0x314   :  { %624 = vperm.xlu1 %926, %v957_v59  }
 0x318   :  { %627 = vperm.xlu1 %926, %v959_v60  }
 0x31c   :  { %630 = vperm.xlu1 %926, %v961_v61  }
 0x382   :  { %v610_v62 = vpop.permute.xlu0 %609 }
 0x383   :  { %v613_v63 = vpop.permute.xlu1 %612  ;;  %v686_v0 = vmul.f32 %v610_v62, %v1226_v17 }
 0x384   :  { %v687_v1 = vmul.f32 %v613_v63, %v1243_v22  ;;  %v639_v31 = vrot.slane %v613_v63, %v1286_v46 }
 0x385   :  { %v694_v2 = vsel %vm87_vm1, %v686_v0, 0.0 }
 0x386   :  { %v701_v5 = vsel %vm87_vm1, %v687_v1, 0.0  ;;  %v695_v6 = vrot.slane %v694_v2, 4 }
 0x387   :  { %v616_v3 = vpop.permute.xlu1 %615  ;;  %v702_v10 = vrot.slane %v701_v5, 4 }
 0x388   :  { %v688_v4 = vmul.f32 %v616_v3, %v1222_v15  ;;  %v696_v11 = vadd.f32 %v695_v6, %v694_v2  ;;  %v643_v34 = vrot.slane %v616_v3, %v1286_v46 }
 0x389   :  { %v703_v16 = vadd.f32 %v702_v10, %v701_v5  ;;  %v797_v10 = vpop.permute.xlu0 %796 }
 0x38a   :  { %v708_v7 = vsel %vm87_vm1, %v688_v4, 0.0  ;;  %v697_v24 = vrot.slane %v696_v11, 2 }
 0x38b   :  { %v619_v8 = vpop.permute.xlu1 %618  ;;  %v709_v12 = vrot.slane %v708_v7, 4  ;;  %v704_v33 = vrot.slane %v703_v16, 2 }
 0x38c   :  { %v689_v9 = vmul.f32 %v619_v8, %v1228_v18  ;;  %v635_v18 = vrot.slane %v610_v62, %v1286_v46  ;;  %v698_v36 = vadd.f32 %v697_v24, %v696_v11  ;;  %v647_v38 = vrot.slane %v619_v8, %v1286_v46 }
 0x38d   :  { %v710_v15 = vadd.f32 %v709_v12, %v708_v7  ;;  %v705_v47 = vadd.f32 %v704_v33, %v703_v16 }
 0x38e   :  { %v715_v17 = vsel %vm87_vm1, %v689_v9, 0.0  ;;  %v664_v43 = vsel %vm503_vm3, %v639_v31, %v635_v18  ;;  %v699_v51 = vrot.slane %v698_v36, 1  ;;  %v750_v18 = vld [vmem:[#allocation4] sm:$0xff] }
 0x38f   :  { %v716_v13 = vrot.slane %v715_v17, 4  ;;  %v622_v22 = vpop.permute.xlu1 %621  ;;  %v665_v48 = vsel %vm505_vm4, %v643_v34, %v664_v43  ;;  %v706_v62 = vrot.slane %v705_v47, 1 }
 0x390   :  { %v690_v14 = vmul.f32 %v622_v22, %v1231_v19  ;;  %v711_v19 = vrot.slane %v710_v15, 2  ;;  %v651_v40 = vrot.slane %v622_v22, %v1286_v46  ;;  %v666_v53 = vsel %vm507_vm5, %v647_v38, %v665_v48 }
 0x391   :  { %v717_v27 = vadd.f32 %v716_v13, %v715_v17  ;;  %v700_v8 = vadd.f32 %v699_v51, %v698_v36 }
 0x392   :  { %v722_v25 = vsel %vm87_vm1, %v690_v14, 0.0  ;;  %v712_v52 = vadd.f32 %v711_v19, %v710_v15  ;;  %v667_v54 = vsel %vm509_vm6, %v651_v40, %v666_v53  ;;  %v598_v40 = vld [vmem:[#allocation3] sm:$0xff] }
 0x393   :  { %v723_v29 = vrot.slane %v722_v25, 4  ;;  %v625_v30 = vpop.permute.xlu1 %624  ;;  %v718_v37 = vrot.slane %v717_v27, 2 }
 0x394   :  { %v691_v32 = vmul.f32 %v625_v30, %v1239_v20  ;;  %v655_v20 = vrot.slane %v625_v30, %v1286_v46  ;;  %v713_v2 = vrot.slane %v712_v52, 1 }
 0x395   :  { %v724_v35 = vadd.f32 %v723_v29, %v722_v25  ;;  %v719_v28 = vadd.f32 %v718_v37, %v717_v27 }
 0x396   :  { %v729_v39 = vsel %vm87_vm1, %v691_v32, 0.0  ;;  %v668_v61 = vsel %vm511_vm7, %v655_v20, %v667_v54  ;;  %v714_v13 = vadd.f32 %v713_v2, %v712_v52  ;;  %v754_v32 = vpop.permute.xlu0 %753 }
 0x397   :  { %v730_v41 = vrot.slane %v729_v39, 4  ;;  %v628_v42 = vpop.permute.xlu1 %627  ;;  %v725_v44 = vrot.slane %v724_v35, 2  ;;  %v720_v5 = vrot.slane %v719_v28, 1  ;;  %v756_v19 = vmul.f32 %v754_v32, %v750_v18 }
 0x398   :  { %v692_v45 = vmul.f32 %v628_v42, %v1241_v21  ;;  %v659_v50 = vrot.slane %v628_v42, %v1286_v46 }
 0x399   :  { %v731_v49 = vadd.f32 %v730_v41, %v729_v39  ;;  %v726_v59 = vadd.f32 %v725_v44, %v724_v35  ;;  %v721_v22 = vadd.f32 %v720_v5, %v719_v28  ;;  %v599_v41 = vmul.f32 %v1326_v55, %v598_v40 }
 0x39a   :  { %v736_v26 = vsel %vm87_vm1, %v692_v45, 0.0  ;;  %v669_v1 = vsel %vm513_vm8, %v659_v50, %v668_v61 }
 0x39b   :  { %v732_v56 = vrot.slane %v731_v49, 2  ;;  %v737_v57 = vrot.slane %v736_v26, 4  ;;  %v631_v58 = vpop.permute.xlu1 %630  ;;  %v727_v9 = vrot.slane %v726_v59, 1 }
 0x39c   :  { %v663_v21 = vrot.slane %v631_v58, %v1286_v46  ;;  %v693_v60 = vmul.f32 %v631_v58, %v1249_v23  ;;  %v707_v23 = vadd.f32 %v706_v62, %v705_v47 }
 0x39d   :  { %v733_v63 = vadd.f32 %v732_v56, %v731_v49  ;;  %v738_v0 = vadd.f32 %v737_v57, %v736_v26  ;;  %v728_v24 = vadd.f32 %v727_v9, %v726_v59  ;;  %v793_v49 = vld [vmem:[#allocation5] sm:$0xff] }
 0x39e   :  { %v743_v3 = vsel %vm87_vm1, %v693_v60, 0.0  ;;  %v670_v4 = vsel %vm515_vm9, %v663_v21, %v669_v1  ;;  %v765_v15 = vsel %vm503_vm3, %v707_v23, %v700_v8  ;;  %v799_v50 = vsub.f32 %v793_v49, %v797_v10 }
 0x39f   :  { %v739_v6 = vrot.slane %v738_v0, 2  ;;  %v744_v7 = vrot.slane %v743_v3, 4  ;;  %v672_v46 = vsel %vm520_vm10, %v670_v4, 0.0  ;;  %v734_v11 = vrot.slane %v733_v63, 1 }
 0x3a0   :  { %673 = vadd.xlane.f32.xlu1 %v672_v46  ;;  %v766_v29 = vsel %vm505_vm4, %v714_v13, %v765_v15  ;;  %v800_v51 = vmul.f32 1.442695, %v799_v50 }
 0x3a1   :  { %v740_v12 = vadd.f32 %v739_v6, %v738_v0  ;;  %v745_v17 = vadd.f32 %v744_v7, %v743_v3  ;;  %v735_v25 = vadd.f32 %v734_v11, %v733_v63  ;;  %v767_v31 = vsel %vm507_vm5, %v721_v22, %v766_v29 }
 0x3a2   :  { %v768_v34 = vsel %vm509_vm6, %v728_v24, %v767_v31 }
 0x3a3   :  { %v741_v14 = vrot.slane %v740_v12, 1  ;;  %v746_v16 = vrot.slane %v745_v17, 2  ;;  %v769_v35 = vsel %vm511_vm7, %v735_v25, %v768_v34 }
 0x3a5   :  { %v747_v27 = vadd.f32 %v746_v16, %v745_v17  ;;  %v742_v30 = vadd.f32 %v741_v14, %v740_v12 }
 0x3a7   :  { %v748_v33 = vrot.slane %v747_v27, 1  ;;  %v770_v38 = vsel %vm513_vm8, %v742_v30, %v769_v35 }
 0x3a9   :  { %v749_v36 = vadd.f32 %v748_v33, %v747_v27 }
 0x3ab   :  { %v771_v39 = vsel %vm515_vm9, %v749_v36, %v770_v38 }
 0x3ac   :  { %v773_v37 = vadd.f32 %v771_v39, %v756_v19 }
 0x3ae   :  { %774 = vst.msk [vmem:[#allocation4] sm:$0xff] %vm87_vm1, %v773_v37 }
 0x3b5   :  { %v784_v52 = vld [vmem:[#allocation4] sm:$0xff] }
 0x42d   :  { %v674_v42 = vpop.xlane.xlu1 %673 }
 0x42e   :  { %v675_v43 = vadd.f32 %v674_v42, %v599_v41 }
 0x430   :  { %677 = vst.msk [vmem:[#allocation3] sm:$0xff] %vm84_vm0, %v675_v43 }
 0x437   :  { %v779_v44 = vld [vmem:[#allocation3] sm:$0xff] }
 0x438   :  { %962 = vrcp.f32 %v779_v44 }
 0x439   :  { %964 = vpow2.f32 %v800_v51 }
 0x442   :  { %v963_v20 = vpop.eup %962 }
 0x443   :  { %v781_v45 = vmul.f32 %v963_v20, %v779_v44  ;;  %v965_v55 = vpop.eup %964 }
 0x445   :  { %v782_v47 = vsub.f32 2.0, %v781_v45 }
 0x447   :  { %v783_v48 = vmul.f32 %v963_v20, %v782_v47 }
 0x449   :  { %787 = vperm.xlu0 %927, %v783_v48  }
 0x4c8   :  { %v788_v53 = vpop.permute.xlu0 %787 }
 0x4c9   :  { %v790_v26 = vmul.f32 %v788_v53, %v784_v52  ;;  %v802_v28 = vmul.f32 %v965_v55, %v788_v53 }
 0x4cb   :  { %791 = vst.msk [vmem:[#allocation14] sm:$0xff] %vm87_vm1, %v790_v26 }
 0x4cc   :  { %803 = vst.msk [vmem:[#allocation15] sm:$0xff] %vm520_vm10, %v802_v28 }
 0x4cd   :  { %1065 = shalt.err (!%p1062_p8)
}
 0x4ce   :  { %s1066_s9 = scalar_lea.hbm %s1403_s6, 128 }
 0x4cf   :  { %p1067_p9 = scmp.ne.s32.totalorder %s1403_s6, %s1066_s9  ;;  %p1070_p10 = scmp.lt.u32.totalorder %s1066_s9, %s1403_s6 }
 0x4d1   :  { %p1072_p11 = pnand %p1070_p10, %p1067_p9 }
 0x4d3   :  { %1075 = shalt.err (!%p1072_p11)
}
 0x4d4   :  { %813 = dma.vmem_to_hbm [thread:$0]  %s811_s25, 128, %s1403_s6, [#allocation8]  }
 0x4d5   :  { %s1076_s17 = scalar_lea.vmem %s821_s28, 128  ;;  %p1081_p13 = scmp.lt.s32.totalorder %s821_s28, %s821_s28 }
 0x4d6   :  { %p1077_p12 = scmp.ne.s32.totalorder %s821_s28, %s1076_s17  ;;  %p1082_p0 = scmp.lt.s32.totalorder %s1076_s17, %s1076_s17 }
 0x4d8   :  { %p1083_p1 = por %p1082_p0, %p1081_p13 }
 0x4da   :  { %p1084_p2 = pnand %p1083_p1, %p1077_p12 }
 0x4dc   :  { %1087 = shalt.err (!%p1084_p2)
}
 0x4dd   :  { %s1088_s21 = scalar_lea.hbm %s1404_s7, 128 }
 0x4de   :  { %p1089_p3 = scmp.ne.s32.totalorder %s1404_s7, %s1088_s21  ;;  %p1092_p4 = scmp.lt.u32.totalorder %s1088_s21, %s1404_s7 }
 0x4e0   :  { %p1094_p5 = pnand %p1092_p4, %p1089_p3 }
 0x4e2   :  { %1097 = shalt.err (!%p1094_p5)
}
 0x4e3   :  { %823 = dma.vmem_to_hbm [thread:$0]  %s821_s28, 128, %s1404_s7, [#allocation16]  }
 0x4e4   :  { %1104 = dma.done.wait [#allocation8], 128  }
 0x4e5   :  { %1105 = vsyncadd [#allocation8], 4294967168 }
 0x4e6   :  { %1106 = dma.done.wait [#allocation16], 128  }
 0x4e7   :  { %1107 = vsyncadd [#allocation16], 4294967168 }
 0x4e8   :  { %830 = vsyncpa [#allocation7], 1 }
 0x4e9   :  { %831 = vsyncpa [#allocation10], 1 }
 0x4ea   :  { %832 = vsyncpa [#allocation13], 1 }
 0x4eb   :  { %833 = vsyncpa [#allocation8], 1 }
 0x4ec   :  { %834 = vsyncpa [#allocation16], 1 }

</bundles_post_ra>
